<compile_context>
chip_gen: v6e
topology: v6e:2x2x1
jax: 0.10.0
libtpu: 0.0.40
codegen_flags: <defaults>
</compile_context>

<pallas_src>
import functools

import jax
import jax.numpy as jnp
from jax.experimental import pallas as pl
from jax.experimental.pallas import tpu as pltpu

# ----------------------------- small LFM2-style config -----------------------------
VOCAB = 64
HIDDEN = 64
N_HEADS = 4
N_KV_HEADS = 2
HEAD_DIM = HIDDEN // N_HEADS          # 16
FFN = 128
CONV_K = 3                            # conv_L_cache
LAYER_TYPES = ("conv", "full_attention")
EPS = 1e-5
ROPE_THETA = 1_000_000.0
NEG_INF = -1e30                       # large finite mask value (avoid -inf arithmetic)


# --------------------------------- kernel helpers -----------------------------------
def _rms(x, w, eps):
    """RMSNorm over the last axis in f32. x: (rows, C), w: (1, C)."""
    x = x.astype(jnp.float32)
    var = jnp.mean(x * x, axis=-1, keepdims=True)
    return x * jax.lax.rsqrt(var + eps) * w


def _swiglu(x, w1, w3, w2):
    """SwiGLU MLP: w2( silu(x@w1) * (x@w3) ). bf16 matmuls, f32 accumulation."""
    xb = x.astype(jnp.bfloat16)
    g = jnp.dot(xb, w1, preferred_element_type=jnp.float32)
    u = jnp.dot(xb, w3, preferred_element_type=jnp.float32)
    h = (g * jax.nn.sigmoid(g)) * u
    return jnp.dot(h.astype(jnp.bfloat16), w2, preferred_element_type=jnp.float32)


# --------------------------------- fused layer kernels ------------------------------
def _conv_layer_kernel(h_ref, opn_ref, inproj_ref, convw_ref, outproj_ref,
                       ffnn_ref, w1_ref, w3_ref, w2_ref, o_ref, *, eps, K):
    """Whole conv decoder layer for one batch element: norm -> gated short-conv -> out_proj
    -> residual -> ffn_norm -> SwiGLU -> residual."""
    h = h_ref[0]                                           # (S, H) f32 residual stream
    hn = _rms(h, opn_ref[...], eps)
    hn_b = hn.astype(jnp.bfloat16)

    # in_proj -> B, C, x gates (weights pre-split on the leading axis; no activation split/DMA)
    bg = jnp.dot(hn_b, inproj_ref[0], preferred_element_type=jnp.float32)
    cg = jnp.dot(hn_b, inproj_ref[1], preferred_element_type=jnp.float32)
    xg = jnp.dot(hn_b, inproj_ref[2], preferred_element_type=jnp.float32)

    # gated causal depthwise short conv along the sequence (sublane) axis
    bx = bg * xg                                           # (S, H)
    rows = jax.lax.broadcasted_iota(jnp.int32, bx.shape, 0)
    acc = bx * convw_ref[K - 1:K, :]                       # zero-shift tap
    for k in range(K - 1):                                 # tap k multiplies bx[t - (K-1-k)]
        shift = K - 1 - k
        sh = pltpu.roll(bx, shift, 0)
        sh = jnp.where(rows >= shift, sh, 0.0)             # causal zero padding
        acc = acc + sh * convw_ref[k:k + 1, :]
    y = cg * acc

    op = jnp.dot(y.astype(jnp.bfloat16), outproj_ref[...],
                 preferred_element_type=jnp.float32)
    h1 = h + op                                            # residual

    hf = _rms(h1, ffnn_ref[...], eps)
    o_ref[0] = h1 + _swiglu(hf, w1_ref[...], w3_ref[...], w2_ref[...])


def _attn_layer_kernel(h_ref, am_ref, cos_ref, sin_ref, opn_ref,
                       wq_ref, wk_ref, wv_ref, qln_ref, kln_ref, rot_ref,
                       wo_ref, ffnn_ref, w1_ref, w3_ref, w2_ref, o_ref,
                       *, eps, n_heads, n_kv_heads):
    """Whole attention decoder layer for one batch element: norm -> QKV proj -> per-head
    QK-RMSNorm -> RoPE -> masked softmax attention (GQA) -> fused W_o -> residual
    -> ffn_norm -> SwiGLU -> residual."""
    h = h_ref[0]                                           # (S, H) f32 residual stream
    S, H = h.shape
    hn = _rms(h, opn_ref[...], eps)
    hn_b = hn.astype(jnp.bfloat16)

    cos = cos_ref[0]                                       # (S, D)
    sin = sin_ref[0]
    rot = rot_ref[...]                                     # (D, D) rotate_half matrix

    # additive mask built in-kernel: causal + key padding (no (B,S,S) HBM mask)
    row = jax.lax.broadcasted_iota(jnp.int32, (S, S), 0)
    col = jax.lax.broadcasted_iota(jnp.int32, (S, S), 1)
    bias = (jnp.where(col <= row, 0.0, NEG_INF)
            + jnp.where(am_ref[0] > 0.0, 0.0, NEG_INF))    # (S,S) + (1,S) -> (S,S)

    # shared GQA K/V heads: project, per-head RMSNorm, RoPE — computed once per kv head
    ks, vs = [], []
    for g in range(n_kv_heads):
        kh = jnp.dot(hn_b, wk_ref[g], preferred_element_type=jnp.float32)
        kh = _rms(kh, kln_ref[...], eps)
        kh = kh * cos + jnp.dot(kh, rot, preferred_element_type=jnp.float32) * sin
        vh = jnp.dot(hn_b, wv_ref[g], preferred_element_type=jnp.float32)
        ks.append(kh.astype(jnp.bfloat16))
        vs.append(vh.astype(jnp.bfloat16))

    rep = n_heads // n_kv_heads
    attn_out = jnp.zeros((S, H), jnp.float32)
    for hd in range(n_heads):
        g = hd // rep                                      # GQA head mapping (no jnp.repeat)
        qh = jnp.dot(hn_b, wq_ref[hd], preferred_element_type=jnp.float32)
        qh = _rms(qh, qln_ref[...], eps)                   # q_ln is pre-scaled by 1/sqrt(D)
        qh = qh * cos + jnp.dot(qh, rot, preferred_element_type=jnp.float32) * sin
        s = jax.lax.dot_general(qh.astype(jnp.bfloat16), ks[g],
                                (((1,), (1,)), ((), ())),
                                preferred_element_type=jnp.float32)    # (S_q, S_k)
        s = s + bias
        m = jnp.max(s, axis=-1, keepdims=True)
        p = jnp.exp(s - m)
        l = jnp.sum(p, axis=-1, keepdims=True)
        oh = jnp.dot(p.astype(jnp.bfloat16), vs[g], preferred_element_type=jnp.float32)
        oh = oh * pl.reciprocal(l, approx=True)
        # fused output projection: accumulate this head's row-slice of W_o
        attn_out = attn_out + jnp.dot(oh.astype(jnp.bfloat16), wo_ref[hd],
                                      preferred_element_type=jnp.float32)

    h1 = h + attn_out                                      # residual
    hf = _rms(h1, ffnn_ref[...], eps)
    o_ref[0] = h1 + _swiglu(hf, w1_ref[...], w3_ref[...], w2_ref[...])


def _final_norm_kernel(h_ref, w_ref, o_ref, *, eps):
    o_ref[0] = _rms(h_ref[0], w_ref[...], eps)


# --------------------------------- pallas_call wrappers -----------------------------
def conv_layer(h, lp):
    B, S, H = h.shape
    K = lp["conv_w"].shape[0]
    F = lp["w1"].shape[1]
    bf16 = jnp.bfloat16
    return pl.pallas_call(
        functools.partial(_conv_layer_kernel, eps=EPS, K=K),
        out_shape=jax.ShapeDtypeStruct((B, S, H), jnp.float32),
        grid=(B,),
        in_specs=[
            pl.BlockSpec((1, S, H), lambda b: (b, 0, 0)),      # hidden states
            pl.BlockSpec((1, H), lambda b: (0, 0)),            # operator_norm
            pl.BlockSpec((3, H, H), lambda b: (0, 0, 0)),      # in_proj (B,C,x) bf16
            pl.BlockSpec((K, H), lambda b: (0, 0)),            # depthwise conv taps
            pl.BlockSpec((H, H), lambda b: (0, 0)),            # out_proj bf16
            pl.BlockSpec((1, H), lambda b: (0, 0)),            # ffn_norm
            pl.BlockSpec((H, F), lambda b: (0, 0)),            # w1 bf16
            pl.BlockSpec((H, F), lambda b: (0, 0)),            # w3 bf16
            pl.BlockSpec((F, H), lambda b: (0, 0)),            # w2 bf16
        ],
        out_specs=pl.BlockSpec((1, S, H), lambda b: (b, 0, 0)),
        compiler_params=pltpu.CompilerParams(dimension_semantics=("parallel",)),
    )(h,
      lp["operator_norm"].reshape(1, H),
      lp["in_proj"].astype(bf16),
      lp["conv_w"],
      lp["out_proj"].astype(bf16),
      lp["ffn_norm"].reshape(1, H),
      lp["w1"].astype(bf16),
      lp["w3"].astype(bf16),
      lp["w2"].astype(bf16))


def attn_layer(h, am, cos, sin, rot, lp):
    B, S, H = h.shape
    nH, _, D = lp["wq"].shape
    nKV = lp["wk"].shape[0]
    F = lp["w1"].shape[1]
    scale = 1.0 / (D ** 0.5)
    bf16 = jnp.bfloat16
    return pl.pallas_call(
        functools.partial(_attn_layer_kernel, eps=EPS, n_heads=nH, n_kv_heads=nKV),
        out_shape=jax.ShapeDtypeStruct((B, S, H), jnp.float32),
        grid=(B,),
        in_specs=[
            pl.BlockSpec((1, S, H), lambda b: (b, 0, 0)),      # hidden states
            pl.BlockSpec((1, 1, S), lambda b: (b, 0, 0)),      # attention-mask row
            pl.BlockSpec((1, S, D), lambda b: (b, 0, 0)),      # rope cos
            pl.BlockSpec((1, S, D), lambda b: (b, 0, 0)),      # rope sin
            pl.BlockSpec((1, H), lambda b: (0, 0)),            # operator_norm
            pl.BlockSpec((nH, H, D), lambda b: (0, 0, 0)),     # wq bf16 (per head)
            pl.BlockSpec((nKV, H, D), lambda b: (0, 0, 0)),    # wk bf16 (per kv head)
            pl.BlockSpec((nKV, H, D), lambda b: (0, 0, 0)),    # wv bf16 (per kv head)
            pl.BlockSpec((1, D), lambda b: (0, 0)),            # q_ln (pre-scaled by 1/sqrt(D))
            pl.BlockSpec((1, D), lambda b: (0, 0)),            # k_ln
            pl.BlockSpec((D, D), lambda b: (0, 0)),            # rotate_half matrix
            pl.BlockSpec((nH, D, H), lambda b: (0, 0, 0)),     # wo bf16 (per head row-slice)
            pl.BlockSpec((1, H), lambda b: (0, 0)),            # ffn_norm
            pl.BlockSpec((H, F), lambda b: (0, 0)),            # w1 bf16
            pl.BlockSpec((H, F), lambda b: (0, 0)),            # w3 bf16
            pl.BlockSpec((F, H), lambda b: (0, 0)),            # w2 bf16
        ],
        out_specs=pl.BlockSpec((1, S, H), lambda b: (b, 0, 0)),
        compiler_params=pltpu.CompilerParams(dimension_semantics=("parallel",)),
    )(h, am, cos, sin,
      lp["operator_norm"].reshape(1, H),
      lp["wq"].astype(bf16), lp["wk"].astype(bf16), lp["wv"].astype(bf16),
      (lp["q_ln"] * scale).reshape(1, D), lp["k_ln"].reshape(1, D),
      rot,
      lp["wo"].astype(bf16),
      lp["ffn_norm"].reshape(1, H),
      lp["w1"].astype(bf16), lp["w3"].astype(bf16), lp["w2"].astype(bf16))


def final_norm(h, w):
    B, S, H = h.shape
    return pl.pallas_call(
        functools.partial(_final_norm_kernel, eps=EPS),
        out_shape=jax.ShapeDtypeStruct((B, S, H), jnp.float32),
        grid=(B,),
        in_specs=[pl.BlockSpec((1, S, H), lambda b: (b, 0, 0)),
                  pl.BlockSpec((1, H), lambda b: (0, 0))],
        out_specs=pl.BlockSpec((1, S, H), lambda b: (b, 0, 0)),
        compiler_params=pltpu.CompilerParams(dimension_semantics=("parallel",)),
    )(h, w.reshape(1, H))


# ------------------------------------ JAX glue --------------------------------------
def rope_cos_sin(position_ids, head_dim, theta):
    inv_freq = 1.0 / (theta ** (jnp.arange(0, head_dim, 2, dtype=jnp.float32) / head_dim))
    freqs = position_ids.astype(jnp.float32)[:, :, None] * inv_freq[None, None, :]
    emb = jnp.concatenate([freqs, freqs], axis=-1)         # (B, S, D)
    return jnp.cos(emb), jnp.sin(emb)


def rotate_half_matrix(head_dim):
    """R such that x @ R == concat([-x[..., d:], x[..., :d]], axis=-1) (HF rotate_half)."""
    d = head_dim // 2
    idx = jnp.arange(d)
    r = jnp.zeros((head_dim, head_dim), jnp.float32)
    r = r.at[idx + d, idx].set(-1.0)
    r = r.at[idx, idx + d].set(1.0)
    return r


def init_params(key):
    def nrm(k, shape, scale=0.02):
        return scale * jax.random.normal(k, shape, dtype=jnp.float32)

    keys = iter(jax.random.split(key, 64))
    params = {"embed": nrm(next(keys), (VOCAB, HIDDEN), 1.0),
              "embedding_norm": jnp.ones((HIDDEN,), jnp.float32),
              "layers": []}
    for lt in LAYER_TYPES:
        lp = {"operator_norm": jnp.ones((HIDDEN,), jnp.float32),
              "ffn_norm": jnp.ones((HIDDEN,), jnp.float32),
              "w1": nrm(next(keys), (HIDDEN, FFN)),
              "w3": nrm(next(keys), (HIDDEN, FFN)),
              "w2": nrm(next(keys), (FFN, HIDDEN))}
        if lt == "conv":
            lp["in_proj"] = nrm(next(keys), (3, HIDDEN, HIDDEN))       # B, C, x projections
            lp["conv_w"] = nrm(next(keys), (CONV_K, HIDDEN), 0.2)      # depthwise taps
            lp["out_proj"] = nrm(next(keys), (HIDDEN, HIDDEN))
        else:
            lp["wq"] = nrm(next(keys), (N_HEADS, HIDDEN, HEAD_DIM))
            lp["wk"] = nrm(next(keys), (N_KV_HEADS, HIDDEN, HEAD_DIM))
            lp["wv"] = nrm(next(keys), (N_KV_HEADS, HIDDEN, HEAD_DIM))
            lp["wo"] = nrm(next(keys), (N_HEADS, HEAD_DIM, HIDDEN))
            lp["q_ln"] = jnp.ones((HEAD_DIM,), jnp.float32)
            lp["k_ln"] = jnp.ones((HEAD_DIM,), jnp.float32)
        params["layers"].append(lp)
    return params


def lfm2_forward(params, input_ids, attention_mask, position_ids):
    """Returns last_hidden_state: (B, S, HIDDEN) float32."""
    B, S = input_ids.shape
    h = params["embed"][input_ids]                         # token-embedding gather (glue)
    am = attention_mask.astype(jnp.float32).reshape(B, 1, S)
    cos, sin = rope_cos_sin(position_ids, HEAD_DIM, ROPE_THETA)
    rot = rotate_half_matrix(HEAD_DIM)

    for lt, lp in zip(LAYER_TYPES, params["layers"]):
        if lt == "conv":
            h = conv_layer(h, lp)
        else:
            h = attn_layer(h, am, cos, sin, rot, lp)
    return final_norm(h, params["embedding_norm"])


# -------------------------------------- main ----------------------------------------
if __name__ == "__main__":
    B, S = 2, 16
    key = jax.random.PRNGKey(0)
    k_ids, k_par = jax.random.split(key)

    # int64 in the PyTorch script; JAX default is int32 (same values, x64 disabled)
    input_ids = jax.random.randint(k_ids, (B, S), 0, VOCAB, dtype=jnp.int32)
    attention_mask = jnp.ones((B, S), dtype=jnp.int32)
    position_ids = jnp.broadcast_to(jnp.arange(S, dtype=jnp.int32)[None, :], (B, S))

    params = init_params(k_par)

    out = jax.jit(lfm2_forward)(params, input_ids, attention_mask, position_ids)
    out = jax.block_until_ready(out)

    assert out.shape == (B, S, HIDDEN) and out.dtype == jnp.float32
    assert bool(jnp.all(jnp.isfinite(out)))
    print("KERNEL_OK")
</pallas_src>

<mosaic_0001>
module attributes {stable_mosaic.version = 11 : i64} {
  func.func @_conv_layer_kernel(%arg0: i32, %arg1: memref<1x16x64xf32, #tpu.memory_space<vmem>>, %arg2: memref<1x64xf32, #tpu.memory_space<vmem>>, %arg3: memref<3x64x64xbf16, #tpu.memory_space<vmem>>, %arg4: memref<3x64xf32, #tpu.memory_space<vmem>>, %arg5: memref<64x64xbf16, #tpu.memory_space<vmem>>, %arg6: memref<1x64xf32, #tpu.memory_space<vmem>>, %arg7: memref<64x128xbf16, #tpu.memory_space<vmem>>, %arg8: memref<64x128xbf16, #tpu.memory_space<vmem>>, %arg9: memref<128x64xbf16, #tpu.memory_space<vmem>>, %arg10: memref<1x16x64xf32, #tpu.memory_space<vmem>>) attributes {dimension_semantics = [#tpu.dimension_semantics<parallel>], iteration_bounds = array<i64: 2>, scalar_prefetch = 0 : i64, scratch_operands = 0 : i64, tpu.core_type = #tpu.core_type<tc>, window_params = [{transform_indices = @transform_0, window_bounds = array<i64: 1, 16, 64>}, {pipeline_mode = #tpu.pipeline_mode<synchronous>, transform_indices = @transform_1, window_bounds = array<i64: 1, 64>}, {pipeline_mode = #tpu.pipeline_mode<synchronous>, transform_indices = @transform_2, window_bounds = array<i64: 3, 64, 64>}, {pipeline_mode = #tpu.pipeline_mode<synchronous>, transform_indices = @transform_3, window_bounds = array<i64: 3, 64>}, {pipeline_mode = #tpu.pipeline_mode<synchronous>, transform_indices = @transform_4, window_bounds = array<i64: 64, 64>}, {pipeline_mode = #tpu.pipeline_mode<synchronous>, transform_indices = @transform_5, window_bounds = array<i64: 1, 64>}, {pipeline_mode = #tpu.pipeline_mode<synchronous>, transform_indices = @transform_6, window_bounds = array<i64: 64, 128>}, {pipeline_mode = #tpu.pipeline_mode<synchronous>, transform_indices = @transform_7, window_bounds = array<i64: 64, 128>}, {pipeline_mode = #tpu.pipeline_mode<synchronous>, transform_indices = @transform_8, window_bounds = array<i64: 128, 64>}, {transform_indices = @transform_9, window_bounds = array<i64: 1, 16, 64>}]} {
    %c0 = arith.constant 0 : index
    %c0_0 = arith.constant 0 : index
    %c0_1 = arith.constant 0 : index
    %0 = vector.load %arg1[%c0, %c0_0, %c0_1] : memref<1x16x64xf32, #tpu.memory_space<vmem>>, vector<1x16x64xf32>
    %1 = vector.shape_cast %0 : vector<1x16x64xf32> to vector<16x64xf32>
    %c0_2 = arith.constant 0 : index
    %c0_3 = arith.constant 0 : index
    %2 = vector.load %arg2[%c0_2, %c0_3] : memref<1x64xf32, #tpu.memory_space<vmem>>, vector<1x64xf32>
    %3 = arith.mulf %1, %1 : vector<16x64xf32>
    %cst = arith.constant dense<0.000000e+00> : vector<16xf32>
    %4 = vector.multi_reduction <add>, %3, %cst [1] : vector<16x64xf32> to vector<16xf32>
    %5 = vector.shape_cast %4 : vector<16xf32> to vector<16x1xf32>
    %cst_4 = arith.constant 6.400000e+01 : f32
    %6 = vector.broadcast %cst_4 : f32 to vector<16x1xf32>
    %7 = arith.divf %5, %6 : vector<16x1xf32>
    %cst_5 = arith.constant 9.99999974E-6 : f32
    %8 = vector.broadcast %cst_5 : f32 to vector<16x1xf32>
    %9 = arith.addf %7, %8 : vector<16x1xf32>
    %10 = math.rsqrt %9 : vector<16x1xf32>
    %11 = vector.broadcast %10 : vector<16x1xf32> to vector<16x64xf32>
    %12 = arith.mulf %1, %11 : vector<16x64xf32>
    %13 = vector.broadcast %2 : vector<1x64xf32> to vector<16x64xf32>
    %14 = arith.mulf %12, %13 : vector<16x64xf32>
    %15 = arith.truncf %14 : vector<16x64xf32> to vector<16x64xbf16>
    %c0_6 = arith.constant 0 : index
    %c0_7 = arith.constant 0 : index
    %c0_8 = arith.constant 0 : index
    %16 = vector.load %arg3[%c0_6, %c0_7, %c0_8] : memref<3x64x64xbf16, #tpu.memory_space<vmem>>, vector<1x64x64xbf16>
    %17 = vector.shape_cast %16 : vector<1x64x64xbf16> to vector<64x64xbf16>
    %cst_9 = arith.constant dense<0.000000e+00> : vector<16x64xf32>
    %18 = tpu.matmul %15, %17, %cst_9 {dimension_numbers = #tpu.dot_dimension_numbers<[1], [0], [0], [1], [0, 0, 1, 1], [], []>} : vector<16x64xbf16>, vector<64x64xbf16>, vector<16x64xf32> -> vector<16x64xf32>
    %c1 = arith.constant 1 : index
    %c0_10 = arith.constant 0 : index
    %c0_11 = arith.constant 0 : index
    %19 = vector.load %arg3[%c1, %c0_10, %c0_11] : memref<3x64x64xbf16, #tpu.memory_space<vmem>>, vector<1x64x64xbf16>
    %20 = vector.shape_cast %19 : vector<1x64x64xbf16> to vector<64x64xbf16>
    %cst_12 = arith.constant dense<0.000000e+00> : vector<16x64xf32>
    %21 = tpu.matmul %15, %20, %cst_12 {dimension_numbers = #tpu.dot_dimension_numbers<[1], [0], [0], [1], [0, 0, 1, 1], [], []>} : vector<16x64xbf16>, vector<64x64xbf16>, vector<16x64xf32> -> vector<16x64xf32>
    %c2 = arith.constant 2 : index
    %c0_13 = arith.constant 0 : index
    %c0_14 = arith.constant 0 : index
    %22 = vector.load %arg3[%c2, %c0_13, %c0_14] : memref<3x64x64xbf16, #tpu.memory_space<vmem>>, vector<1x64x64xbf16>
    %23 = vector.shape_cast %22 : vector<1x64x64xbf16> to vector<64x64xbf16>
    %cst_15 = arith.constant dense<0.000000e+00> : vector<16x64xf32>
    %24 = tpu.matmul %15, %23, %cst_15 {dimension_numbers = #tpu.dot_dimension_numbers<[1], [0], [0], [1], [0, 0, 1, 1], [], []>} : vector<16x64xbf16>, vector<64x64xbf16>, vector<16x64xf32> -> vector<16x64xf32>
    %25 = arith.mulf %18, %24 : vector<16x64xf32>
    %26 = tpu.iota {dimensions = array<i32: 0>} : vector<16x64xi32>
    %c2_16 = arith.constant 2 : index
    %c0_17 = arith.constant 0 : index
    %27 = vector.load %arg4[%c2_16, %c0_17] : memref<3x64xf32, #tpu.memory_space<vmem>>, vector<1x64xf32>
    %28 = vector.broadcast %27 : vector<1x64xf32> to vector<16x64xf32>
    %29 = arith.mulf %25, %28 : vector<16x64xf32>
    %c2_i32 = arith.constant 2 : i32
    %30 = tpu.dynamic_rotate %25 by %c2_i32 dim 0 : vector<16x64xf32>, i32 -> vector<16x64xf32>
    %c2_i32_18 = arith.constant 2 : i32
    %31 = vector.broadcast %c2_i32_18 : i32 to vector<16x64xi32>
    %32 = arith.cmpi sge, %26, %31 : vector<16x64xi32>
    %cst_19 = arith.constant 0.000000e+00 : f32
    %33 = vector.broadcast %cst_19 : f32 to vector<16x64xf32>
    %34 = arith.select %32, %30, %33 : vector<16x64xi1>, vector<16x64xf32>
    %c0_20 = arith.constant 0 : index
    %c0_21 = arith.constant 0 : index
    %35 = vector.load %arg4[%c0_20, %c0_21] : memref<3x64xf32, #tpu.memory_space<vmem>>, vector<1x64xf32>
    %36 = vector.broadcast %35 : vector<1x64xf32> to vector<16x64xf32>
    %37 = arith.mulf %34, %36 : vector<16x64xf32>
    %38 = arith.addf %29, %37 : vector<16x64xf32>
    %c1_i32 = arith.constant 1 : i32
    %39 = tpu.dynamic_rotate %25 by %c1_i32 dim 0 : vector<16x64xf32>, i32 -> vector<16x64xf32>
    %c1_i32_22 = arith.constant 1 : i32
    %40 = vector.broadcast %c1_i32_22 : i32 to vector<16x64xi32>
    %41 = arith.cmpi sge, %26, %40 : vector<16x64xi32>
    %cst_23 = arith.constant 0.000000e+00 : f32
    %42 = vector.broadcast %cst_23 : f32 to vector<16x64xf32>
    %43 = arith.select %41, %39, %42 : vector<16x64xi1>, vector<16x64xf32>
    %c1_24 = arith.constant 1 : index
    %c0_25 = arith.constant 0 : index
    %44 = vector.load %arg4[%c1_24, %c0_25] : memref<3x64xf32, #tpu.memory_space<vmem>>, vector<1x64xf32>
    %45 = vector.broadcast %44 : vector<1x64xf32> to vector<16x64xf32>
    %46 = arith.mulf %43, %45 : vector<16x64xf32>
    %47 = arith.addf %38, %46 : vector<16x64xf32>
    %48 = arith.mulf %21, %47 : vector<16x64xf32>
    %49 = arith.truncf %48 : vector<16x64xf32> to vector<16x64xbf16>
    %c0_26 = arith.constant 0 : index
    %c0_27 = arith.constant 0 : index
    %50 = vector.load %arg5[%c0_26, %c0_27] : memref<64x64xbf16, #tpu.memory_space<vmem>>, vector<64x64xbf16>
    %cst_28 = arith.constant dense<0.000000e+00> : vector<16x64xf32>
    %51 = tpu.matmul %49, %50, %cst_28 {dimension_numbers = #tpu.dot_dimension_numbers<[1], [0], [0], [1], [0, 0, 1, 1], [], []>} : vector<16x64xbf16>, vector<64x64xbf16>, vector<16x64xf32> -> vector<16x64xf32>
    %52 = arith.addf %1, %51 : vector<16x64xf32>
    %c0_29 = arith.constant 0 : index
    %c0_30 = arith.constant 0 : index
    %53 = vector.load %arg6[%c0_29, %c0_30] : memref<1x64xf32, #tpu.memory_space<vmem>>, vector<1x64xf32>
    %54 = arith.mulf %52, %52 : vector<16x64xf32>
    %cst_31 = arith.constant dense<0.000000e+00> : vector<16xf32>
    %55 = vector.multi_reduction <add>, %54, %cst_31 [1] : vector<16x64xf32> to vector<16xf32>
    %56 = vector.shape_cast %55 : vector<16xf32> to vector<16x1xf32>
    %cst_32 = arith.constant 6.400000e+01 : f32
    %57 = vector.broadcast %cst_32 : f32 to vector<16x1xf32>
    %58 = arith.divf %56, %57 : vector<16x1xf32>
    %cst_33 = arith.constant 9.99999974E-6 : f32
    %59 = vector.broadcast %cst_33 : f32 to vector<16x1xf32>
    %60 = arith.addf %58, %59 : vector<16x1xf32>
    %61 = math.rsqrt %60 : vector<16x1xf32>
    %62 = vector.broadcast %61 : vector<16x1xf32> to vector<16x64xf32>
    %63 = arith.mulf %52, %62 : vector<16x64xf32>
    %64 = vector.broadcast %53 : vector<1x64xf32> to vector<16x64xf32>
    %65 = arith.mulf %63, %64 : vector<16x64xf32>
    %c0_34 = arith.constant 0 : index
    %c0_35 = arith.constant 0 : index
    %66 = vector.load %arg7[%c0_34, %c0_35] : memref<64x128xbf16, #tpu.memory_space<vmem>>, vector<64x128xbf16>
    %c0_36 = arith.constant 0 : index
    %c0_37 = arith.constant 0 : index
    %67 = vector.load %arg8[%c0_36, %c0_37] : memref<64x128xbf16, #tpu.memory_space<vmem>>, vector<64x128xbf16>
    %c0_38 = arith.constant 0 : index
    %c0_39 = arith.constant 0 : index
    %68 = vector.load %arg9[%c0_38, %c0_39] : memref<128x64xbf16, #tpu.memory_space<vmem>>, vector<128x64xbf16>
    %69 = arith.truncf %65 : vector<16x64xf32> to vector<16x64xbf16>
    %cst_40 = arith.constant dense<0.000000e+00> : vector<16x128xf32>
    %70 = tpu.matmul %69, %66, %cst_40 {dimension_numbers = #tpu.dot_dimension_numbers<[1], [0], [0], [1], [0, 0, 1, 1], [], []>} : vector<16x64xbf16>, vector<64x128xbf16>, vector<16x128xf32> -> vector<16x128xf32>
    %cst_41 = arith.constant dense<0.000000e+00> : vector<16x128xf32>
    %71 = tpu.matmul %69, %67, %cst_41 {dimension_numbers = #tpu.dot_dimension_numbers<[1], [0], [0], [1], [0, 0, 1, 1], [], []>} : vector<16x64xbf16>, vector<64x128xbf16>, vector<16x128xf32> -> vector<16x128xf32>
    %72 = arith.negf %70 : vector<16x128xf32>
    %73 = math.exp %72 : vector<16x128xf32>
    %cst_42 = arith.constant 1.000000e+00 : f32
    %74 = vector.broadcast %cst_42 : f32 to vector<16x128xf32>
    %75 = arith.addf %74, %73 : vector<16x128xf32>
    %76 = arith.divf %74, %75 : vector<16x128xf32>
    %77 = arith.mulf %70, %76 : vector<16x128xf32>
    %78 = arith.mulf %77, %71 : vector<16x128xf32>
    %79 = arith.truncf %78 : vector<16x128xf32> to vector<16x128xbf16>
    %cst_43 = arith.constant dense<0.000000e+00> : vector<16x64xf32>
    %80 = tpu.matmul %79, %68, %cst_43 {dimension_numbers = #tpu.dot_dimension_numbers<[1], [0], [0], [1], [0, 0, 1, 1], [], []>} : vector<16x128xbf16>, vector<128x64xbf16>, vector<16x64xf32> -> vector<16x64xf32>
    %81 = arith.addf %52, %80 : vector<16x64xf32>
    %c0_44 = arith.constant 0 : index
    %c0_45 = arith.constant 0 : index
    %c0_46 = arith.constant 0 : index
    %82 = vector.load %arg10[%c0_44, %c0_45, %c0_46] : memref<1x16x64xf32, #tpu.memory_space<vmem>>, vector<1x16x64xf32>
    %83 = vector.shape_cast %82 : vector<1x16x64xf32> to vector<16x64xf32>
    %84 = vector.shape_cast %81 : vector<16x64xf32> to vector<1x16x64xf32>
    tpu.vector_store %arg10[%c0_44, %c0_45, %c0_46], %84 {strides = array<i32>} : memref<1x16x64xf32, #tpu.memory_space<vmem>>, vector<1x16x64xf32>,
    return
  }
  func.func @transform_0(%arg0: i32) -> (i32, i32, i32) {
    %c0_i32 = arith.constant 0 : i32
    %c0_i32_0 = arith.constant 0 : i32
    %c0_i32_1 = arith.constant 0 : i32
    return %arg0, %c0_i32, %c0_i32_0 : i32, i32, i32
  }
  func.func @transform_1(%arg0: i32) -> (i32, i32) {
    %c0_i32 = arith.constant 0 : i32
    %c0_i32_0 = arith.constant 0 : i32
    %c0_i32_1 = arith.constant 0 : i32
    return %c0_i32, %c0_i32_0 : i32, i32
  }
  func.func @transform_2(%arg0: i32) -> (i32, i32, i32) {
    %c0_i32 = arith.constant 0 : i32
    %c0_i32_0 = arith.constant 0 : i32
    %c0_i32_1 = arith.constant 0 : i32
    %c0_i32_2 = arith.constant 0 : i32
    return %c0_i32, %c0_i32_0, %c0_i32_1 : i32, i32, i32
  }
  func.func @transform_3(%arg0: i32) -> (i32, i32) {
    %c0_i32 = arith.constant 0 : i32
    %c0_i32_0 = arith.constant 0 : i32
    %c0_i32_1 = arith.constant 0 : i32
    return %c0_i32, %c0_i32_0 : i32, i32
  }
  func.func @transform_4(%arg0: i32) -> (i32, i32) {
    %c0_i32 = arith.constant 0 : i32
    %c0_i32_0 = arith.constant 0 : i32
    %c0_i32_1 = arith.constant 0 : i32
    return %c0_i32, %c0_i32_0 : i32, i32
  }
  func.func @transform_5(%arg0: i32) -> (i32, i32) {
    %c0_i32 = arith.constant 0 : i32
    %c0_i32_0 = arith.constant 0 : i32
    %c0_i32_1 = arith.constant 0 : i32
    return %c0_i32, %c0_i32_0 : i32, i32
  }
  func.func @transform_6(%arg0: i32) -> (i32, i32) {
    %c0_i32 = arith.constant 0 : i32
    %c0_i32_0 = arith.constant 0 : i32
    %c0_i32_1 = arith.constant 0 : i32
    return %c0_i32, %c0_i32_0 : i32, i32
  }
  func.func @transform_7(%arg0: i32) -> (i32, i32) {
    %c0_i32 = arith.constant 0 : i32
    %c0_i32_0 = arith.constant 0 : i32
    %c0_i32_1 = arith.constant 0 : i32
    return %c0_i32, %c0_i32_0 : i32, i32
  }
  func.func @transform_8(%arg0: i32) -> (i32, i32) {
    %c0_i32 = arith.constant 0 : i32
    %c0_i32_0 = arith.constant 0 : i32
    %c0_i32_1 = arith.constant 0 : i32
    return %c0_i32, %c0_i32_0 : i32, i32
  }
  func.func @transform_9(%arg0: i32) -> (i32, i32, i32) {
    %c0_i32 = arith.constant 0 : i32
    %c0_i32_0 = arith.constant 0 : i32
    %c0_i32_1 = arith.constant 0 : i32
    return %arg0, %c0_i32, %c0_i32_0 : i32, i32, i32
  }
}

module attributes {stable_mosaic.version = 11 : i64} {
  func.func @_final_norm_kernel(%arg0: i32, %arg1: memref<1x16x64xf32, #tpu.memory_space<vmem>>, %arg2: memref<1x64xf32, #tpu.memory_space<vmem>>, %arg3: memref<1x16x64xf32, #tpu.memory_space<vmem>>) attributes {dimension_semantics = [#tpu.dimension_semantics<parallel>], iteration_bounds = array<i64: 2>, scalar_prefetch = 0 : i64, scratch_operands = 0 : i64, tpu.core_type = #tpu.core_type<tc>, window_params = [{transform_indices = @transform_0, window_bounds = array<i64: 1, 16, 64>}, {pipeline_mode = #tpu.pipeline_mode<synchronous>, transform_indices = @transform_1, window_bounds = array<i64: 1, 64>}, {transform_indices = @transform_2, window_bounds = array<i64: 1, 16, 64>}]} {
    %c0 = arith.constant 0 : index
    %c0_0 = arith.constant 0 : index
    %c0_1 = arith.constant 0 : index
    %0 = vector.load %arg1[%c0, %c0_0, %c0_1] : memref<1x16x64xf32, #tpu.memory_space<vmem>>, vector<1x16x64xf32>
    %1 = vector.shape_cast %0 : vector<1x16x64xf32> to vector<16x64xf32>
    %c0_2 = arith.constant 0 : index
    %c0_3 = arith.constant 0 : index
    %2 = vector.load %arg2[%c0_2, %c0_3] : memref<1x64xf32, #tpu.memory_space<vmem>>, vector<1x64xf32>
    %3 = arith.mulf %1, %1 : vector<16x64xf32>
    %cst = arith.constant dense<0.000000e+00> : vector<16xf32>
    %4 = vector.multi_reduction <add>, %3, %cst [1] : vector<16x64xf32> to vector<16xf32>
    %5 = vector.shape_cast %4 : vector<16xf32> to vector<16x1xf32>
    %cst_4 = arith.constant 6.400000e+01 : f32
    %6 = vector.broadcast %cst_4 : f32 to vector<16x1xf32>
    %7 = arith.divf %5, %6 : vector<16x1xf32>
    %cst_5 = arith.constant 9.99999974E-6 : f32
    %8 = vector.broadcast %cst_5 : f32 to vector<16x1xf32>
    %9 = arith.addf %7, %8 : vector<16x1xf32>
    %10 = math.rsqrt %9 : vector<16x1xf32>
    %11 = vector.broadcast %10 : vector<16x1xf32> to vector<16x64xf32>
    %12 = arith.mulf %1, %11 : vector<16x64xf32>
    %13 = vector.broadcast %2 : vector<1x64xf32> to vector<16x64xf32>
    %14 = arith.mulf %12, %13 : vector<16x64xf32>
    %c0_6 = arith.constant 0 : index
    %c0_7 = arith.constant 0 : index
    %c0_8 = arith.constant 0 : index
    %15 = vector.load %arg3[%c0_6, %c0_7, %c0_8] : memref<1x16x64xf32, #tpu.memory_space<vmem>>, vector<1x16x64xf32>
    %16 = vector.shape_cast %15 : vector<1x16x64xf32> to vector<16x64xf32>
    %17 = vector.shape_cast %14 : vector<16x64xf32> to vector<1x16x64xf32>
    tpu.vector_store %arg3[%c0_6, %c0_7, %c0_8], %17 {strides = array<i32>} : memref<1x16x64xf32, #tpu.memory_space<vmem>>, vector<1x16x64xf32>,
    return
  }
  func.func @transform_0(%arg0: i32) -> (i32, i32, i32) {
    %c0_i32 = arith.constant 0 : i32
    %c0_i32_0 = arith.constant 0 : i32
    %c0_i32_1 = arith.constant 0 : i32
    return %arg0, %c0_i32, %c0_i32_0 : i32, i32, i32
  }
  func.func @transform_1(%arg0: i32) -> (i32, i32) {
    %c0_i32 = arith.constant 0 : i32
    %c0_i32_0 = arith.constant 0 : i32
    %c0_i32_1 = arith.constant 0 : i32
    return %c0_i32, %c0_i32_0 : i32, i32
  }
  func.func @transform_2(%arg0: i32) -> (i32, i32, i32) {
    %c0_i32 = arith.constant 0 : i32
    %c0_i32_0 = arith.constant 0 : i32
    %c0_i32_1 = arith.constant 0 : i32
    return %arg0, %c0_i32, %c0_i32_0 : i32, i32, i32
  }
}

module attributes {stable_mosaic.version = 11 : i64} {
  func.func @_attn_layer_kernel(%arg0: i32, %arg1: memref<1x16x64xf32, #tpu.memory_space<vmem>>, %arg2: memref<1x1x16xf32, #tpu.memory_space<vmem>>, %arg3: memref<1x16x16xf32, #tpu.memory_space<vmem>>, %arg4: memref<1x16x16xf32, #tpu.memory_space<vmem>>, %arg5: memref<1x64xf32, #tpu.memory_space<vmem>>, %arg6: memref<4x64x16xbf16, #tpu.memory_space<vmem>>, %arg7: memref<2x64x16xbf16, #tpu.memory_space<vmem>>, %arg8: memref<2x64x16xbf16, #tpu.memory_space<vmem>>, %arg9: memref<1x16xf32, #tpu.memory_space<vmem>>, %arg10: memref<1x16xf32, #tpu.memory_space<vmem>>, %arg11: memref<16x16xf32, #tpu.memory_space<vmem>>, %arg12: memref<4x16x64xbf16, #tpu.memory_space<vmem>>, %arg13: memref<1x64xf32, #tpu.memory_space<vmem>>, %arg14: memref<64x128xbf16, #tpu.memory_space<vmem>>, %arg15: memref<64x128xbf16, #tpu.memory_space<vmem>>, %arg16: memref<128x64xbf16, #tpu.memory_space<vmem>>, %arg17: memref<1x16x64xf32, #tpu.memory_space<vmem>>) attributes {dimension_semantics = [#tpu.dimension_semantics<parallel>], iteration_bounds = array<i64: 2>, scalar_prefetch = 0 : i64, scratch_operands = 0 : i64, tpu.core_type = #tpu.core_type<tc>, window_params = [{transform_indices = @transform_0, window_bounds = array<i64: 1, 16, 64>}, {transform_indices = @transform_1, window_bounds = array<i64: 1, 1, 16>}, {transform_indices = @transform_2, window_bounds = array<i64: 1, 16, 16>}, {transform_indices = @transform_3, window_bounds = array<i64: 1, 16, 16>}, {pipeline_mode = #tpu.pipeline_mode<synchronous>, transform_indices = @transform_4, window_bounds = array<i64: 1, 64>}, {pipeline_mode = #tpu.pipeline_mode<synchronous>, transform_indices = @transform_5, window_bounds = array<i64: 4, 64, 16>}, {pipeline_mode = #tpu.pipeline_mode<synchronous>, transform_indices = @transform_6, window_bounds = array<i64: 2, 64, 16>}, {pipeline_mode = #tpu.pipeline_mode<synchronous>, transform_indices = @transform_7, window_bounds = array<i64: 2, 64, 16>}, {pipeline_mode = #tpu.pipeline_mode<synchronous>, transform_indices = @transform_8, window_bounds = array<i64: 1, 16>}, {pipeline_mode = #tpu.pipeline_mode<synchronous>, transform_indices = @transform_9, window_bounds = array<i64: 1, 16>}, {pipeline_mode = #tpu.pipeline_mode<synchronous>, transform_indices = @transform_10, window_bounds = array<i64: 16, 16>}, {pipeline_mode = #tpu.pipeline_mode<synchronous>, transform_indices = @transform_11, window_bounds = array<i64: 4, 16, 64>}, {pipeline_mode = #tpu.pipeline_mode<synchronous>, transform_indices = @transform_12, window_bounds = array<i64: 1, 64>}, {pipeline_mode = #tpu.pipeline_mode<synchronous>, transform_indices = @transform_13, window_bounds = array<i64: 64, 128>}, {pipeline_mode = #tpu.pipeline_mode<synchronous>, transform_indices = @transform_14, window_bounds = array<i64: 64, 128>}, {pipeline_mode = #tpu.pipeline_mode<synchronous>, transform_indices = @transform_15, window_bounds = array<i64: 128, 64>}, {transform_indices = @transform_16, window_bounds = array<i64: 1, 16, 64>}]} {
    %c0 = arith.constant 0 : index
    %c0_0 = arith.constant 0 : index
    %c0_1 = arith.constant 0 : index
    %0 = vector.load %arg1[%c0, %c0_0, %c0_1] : memref<1x16x64xf32, #tpu.memory_space<vmem>>, vector<1x16x64xf32>
    %1 = vector.shape_cast %0 : vector<1x16x64xf32> to vector<16x64xf32>
    %c0_2 = arith.constant 0 : index
    %c0_3 = arith.constant 0 : index
    %2 = vector.load %arg5[%c0_2, %c0_3] : memref<1x64xf32, #tpu.memory_space<vmem>>, vector<1x64xf32>
    %3 = arith.mulf %1, %1 : vector<16x64xf32>
    %cst = arith.constant dense<0.000000e+00> : vector<16xf32>
    %4 = vector.multi_reduction <add>, %3, %cst [1] : vector<16x64xf32> to vector<16xf32>
    %5 = vector.shape_cast %4 : vector<16xf32> to vector<16x1xf32>
    %cst_4 = arith.constant 6.400000e+01 : f32
    %6 = vector.broadcast %cst_4 : f32 to vector<16x1xf32>
    %7 = arith.divf %5, %6 : vector<16x1xf32>
    %cst_5 = arith.constant 9.99999974E-6 : f32
    %8 = vector.broadcast %cst_5 : f32 to vector<16x1xf32>
    %9 = arith.addf %7, %8 : vector<16x1xf32>
    %10 = math.rsqrt %9 : vector<16x1xf32>
    %11 = vector.broadcast %10 : vector<16x1xf32> to vector<16x64xf32>
    %12 = arith.mulf %1, %11 : vector<16x64xf32>
    %13 = vector.broadcast %2 : vector<1x64xf32> to vector<16x64xf32>
    %14 = arith.mulf %12, %13 : vector<16x64xf32>
    %15 = arith.truncf %14 : vector<16x64xf32> to vector<16x64xbf16>
    %c0_6 = arith.constant 0 : index
    %c0_7 = arith.constant 0 : index
    %c0_8 = arith.constant 0 : index
    %16 = vector.load %arg3[%c0_6, %c0_7, %c0_8] : memref<1x16x16xf32, #tpu.memory_space<vmem>>, vector<1x16x16xf32>
    %17 = vector.shape_cast %16 : vector<1x16x16xf32> to vector<16x16xf32>
    %c0_9 = arith.constant 0 : index
    %c0_10 = arith.constant 0 : index
    %c0_11 = arith.constant 0 : index
    %18 = vector.load %arg4[%c0_9, %c0_10, %c0_11] : memref<1x16x16xf32, #tpu.memory_space<vmem>>, vector<1x16x16xf32>
    %19 = vector.shape_cast %18 : vector<1x16x16xf32> to vector<16x16xf32>
    %c0_12 = arith.constant 0 : index
    %c0_13 = arith.constant 0 : index
    %20 = vector.load %arg11[%c0_12, %c0_13] : memref<16x16xf32, #tpu.memory_space<vmem>>, vector<16x16xf32>
    %21 = tpu.iota {dimensions = array<i32: 0>} : vector<16x16xi32>
    %22 = tpu.iota {dimensions = array<i32: 1>} : vector<16x16xi32>
    %23 = arith.cmpi sle, %22, %21 : vector<16x16xi32>
    %cst_14 = arith.constant 0.000000e+00 : f32
    %cst_15 = arith.constant -1.000000e+30 : f32
    %24 = vector.broadcast %cst_14 : f32 to vector<16x16xf32>
    %25 = vector.broadcast %cst_15 : f32 to vector<16x16xf32>
    %26 = arith.select %23, %24, %25 : vector<16x16xi1>, vector<16x16xf32>
    %c0_16 = arith.constant 0 : index
    %c0_17 = arith.constant 0 : index
    %c0_18 = arith.constant 0 : index
    %27 = vector.load %arg2[%c0_16, %c0_17, %c0_18] : memref<1x1x16xf32, #tpu.memory_space<vmem>>, vector<1x1x16xf32>
    %28 = vector.shape_cast %27 : vector<1x1x16xf32> to vector<1x16xf32>
    %cst_19 = arith.constant 0.000000e+00 : f32
    %29 = vector.broadcast %cst_19 : f32 to vector<1x16xf32>
    %30 = arith.cmpf ogt, %28, %29 : vector<1x16xf32>
    %cst_20 = arith.constant 0.000000e+00 : f32
    %cst_21 = arith.constant -1.000000e+30 : f32
    %31 = vector.broadcast %cst_20 : f32 to vector<1x16xf32>
    %32 = vector.broadcast %cst_21 : f32 to vector<1x16xf32>
    %33 = arith.select %30, %31, %32 : vector<1x16xi1>, vector<1x16xf32>
    %34 = vector.broadcast %33 : vector<1x16xf32> to vector<16x16xf32>
    %35 = arith.addf %26, %34 : vector<16x16xf32>
    %c0_22 = arith.constant 0 : index
    %c0_23 = arith.constant 0 : index
    %c0_24 = arith.constant 0 : index
    %36 = vector.load %arg7[%c0_22, %c0_23, %c0_24] : memref<2x64x16xbf16, #tpu.memory_space<vmem>>, vector<1x64x16xbf16>
    %37 = vector.shape_cast %36 : vector<1x64x16xbf16> to vector<64x16xbf16>
    %cst_25 = arith.constant dense<0.000000e+00> : vector<16x16xf32>
    %38 = tpu.matmul %15, %37, %cst_25 {dimension_numbers = #tpu.dot_dimension_numbers<[1], [0], [0], [1], [0, 0, 1, 1], [], []>} : vector<16x64xbf16>, vector<64x16xbf16>, vector<16x16xf32> -> vector<16x16xf32>
    %c0_26 = arith.constant 0 : index
    %c0_27 = arith.constant 0 : index
    %39 = vector.load %arg10[%c0_26, %c0_27] : memref<1x16xf32, #tpu.memory_space<vmem>>, vector<1x16xf32>
    %40 = arith.mulf %38, %38 : vector<16x16xf32>
    %cst_28 = arith.constant dense<0.000000e+00> : vector<16xf32>
    %41 = vector.multi_reduction <add>, %40, %cst_28 [1] : vector<16x16xf32> to vector<16xf32>
    %42 = vector.shape_cast %41 : vector<16xf32> to vector<16x1xf32>
    %cst_29 = arith.constant 1.600000e+01 : f32
    %43 = vector.broadcast %cst_29 : f32 to vector<16x1xf32>
    %44 = arith.divf %42, %43 : vector<16x1xf32>
    %cst_30 = arith.constant 9.99999974E-6 : f32
    %45 = vector.broadcast %cst_30 : f32 to vector<16x1xf32>
    %46 = arith.addf %44, %45 : vector<16x1xf32>
    %47 = math.rsqrt %46 : vector<16x1xf32>
    %48 = vector.broadcast %47 : vector<16x1xf32> to vector<16x16xf32>
    %49 = arith.mulf %38, %48 : vector<16x16xf32>
    %50 = vector.broadcast %39 : vector<1x16xf32> to vector<16x16xf32>
    %51 = arith.mulf %49, %50 : vector<16x16xf32>
    %52 = arith.mulf %51, %17 : vector<16x16xf32>
    %cst_31 = arith.constant dense<0.000000e+00> : vector<16x16xf32>
    %53 = tpu.matmul %51, %20, %cst_31 {dimension_numbers = #tpu.dot_dimension_numbers<[1], [0], [0], [1], [0, 0, 1, 1], [], []>} : vector<16x16xf32>, vector<16x16xf32>, vector<16x16xf32> -> vector<16x16xf32>
    %54 = arith.mulf %53, %19 : vector<16x16xf32>
    %55 = arith.addf %52, %54 : vector<16x16xf32>
    %c0_32 = arith.constant 0 : index
    %c0_33 = arith.constant 0 : index
    %c0_34 = arith.constant 0 : index
    %56 = vector.load %arg8[%c0_32, %c0_33, %c0_34] : memref<2x64x16xbf16, #tpu.memory_space<vmem>>, vector<1x64x16xbf16>
    %57 = vector.shape_cast %56 : vector<1x64x16xbf16> to vector<64x16xbf16>
    %cst_35 = arith.constant dense<0.000000e+00> : vector<16x16xf32>
    %58 = tpu.matmul %15, %57, %cst_35 {dimension_numbers = #tpu.dot_dimension_numbers<[1], [0], [0], [1], [0, 0, 1, 1], [], []>} : vector<16x64xbf16>, vector<64x16xbf16>, vector<16x16xf32> -> vector<16x16xf32>
    %59 = arith.truncf %55 : vector<16x16xf32> to vector<16x16xbf16>
    %60 = arith.truncf %58 : vector<16x16xf32> to vector<16x16xbf16>
    %c1 = arith.constant 1 : index
    %c0_36 = arith.constant 0 : index
    %c0_37 = arith.constant 0 : index
    %61 = vector.load %arg7[%c1, %c0_36, %c0_37] : memref<2x64x16xbf16, #tpu.memory_space<vmem>>, vector<1x64x16xbf16>
    %62 = vector.shape_cast %61 : vector<1x64x16xbf16> to vector<64x16xbf16>
    %cst_38 = arith.constant dense<0.000000e+00> : vector<16x16xf32>
    %63 = tpu.matmul %15, %62, %cst_38 {dimension_numbers = #tpu.dot_dimension_numbers<[1], [0], [0], [1], [0, 0, 1, 1], [], []>} : vector<16x64xbf16>, vector<64x16xbf16>, vector<16x16xf32> -> vector<16x16xf32>
    %c0_39 = arith.constant 0 : index
    %c0_40 = arith.constant 0 : index
    %64 = vector.load %arg10[%c0_39, %c0_40] : memref<1x16xf32, #tpu.memory_space<vmem>>, vector<1x16xf32>
    %65 = arith.mulf %63, %63 : vector<16x16xf32>
    %cst_41 = arith.constant dense<0.000000e+00> : vector<16xf32>
    %66 = vector.multi_reduction <add>, %65, %cst_41 [1] : vector<16x16xf32> to vector<16xf32>
    %67 = vector.shape_cast %66 : vector<16xf32> to vector<16x1xf32>
    %cst_42 = arith.constant 1.600000e+01 : f32
    %68 = vector.broadcast %cst_42 : f32 to vector<16x1xf32>
    %69 = arith.divf %67, %68 : vector<16x1xf32>
    %cst_43 = arith.constant 9.99999974E-6 : f32
    %70 = vector.broadcast %cst_43 : f32 to vector<16x1xf32>
    %71 = arith.addf %69, %70 : vector<16x1xf32>
    %72 = math.rsqrt %71 : vector<16x1xf32>
    %73 = vector.broadcast %72 : vector<16x1xf32> to vector<16x16xf32>
    %74 = arith.mulf %63, %73 : vector<16x16xf32>
    %75 = vector.broadcast %64 : vector<1x16xf32> to vector<16x16xf32>
    %76 = arith.mulf %74, %75 : vector<16x16xf32>
    %77 = arith.mulf %76, %17 : vector<16x16xf32>
    %cst_44 = arith.constant dense<0.000000e+00> : vector<16x16xf32>
    %78 = tpu.matmul %76, %20, %cst_44 {dimension_numbers = #tpu.dot_dimension_numbers<[1], [0], [0], [1], [0, 0, 1, 1], [], []>} : vector<16x16xf32>, vector<16x16xf32>, vector<16x16xf32> -> vector<16x16xf32>
    %79 = arith.mulf %78, %19 : vector<16x16xf32>
    %80 = arith.addf %77, %79 : vector<16x16xf32>
    %c1_45 = arith.constant 1 : index
    %c0_46 = arith.constant 0 : index
    %c0_47 = arith.constant 0 : index
    %81 = vector.load %arg8[%c1_45, %c0_46, %c0_47] : memref<2x64x16xbf16, #tpu.memory_space<vmem>>, vector<1x64x16xbf16>
    %82 = vector.shape_cast %81 : vector<1x64x16xbf16> to vector<64x16xbf16>
    %cst_48 = arith.constant dense<0.000000e+00> : vector<16x16xf32>
    %83 = tpu.matmul %15, %82, %cst_48 {dimension_numbers = #tpu.dot_dimension_numbers<[1], [0], [0], [1], [0, 0, 1, 1], [], []>} : vector<16x64xbf16>, vector<64x16xbf16>, vector<16x16xf32> -> vector<16x16xf32>
    %84 = arith.truncf %80 : vector<16x16xf32> to vector<16x16xbf16>
    %85 = arith.truncf %83 : vector<16x16xf32> to vector<16x16xbf16>
    %cst_49 = arith.constant 0.000000e+00 : f32
    %86 = vector.broadcast %cst_49 : f32 to vector<16x64xf32>
    %c0_50 = arith.constant 0 : index
    %c0_51 = arith.constant 0 : index
    %c0_52 = arith.constant 0 : index
    %87 = vector.load %arg6[%c0_50, %c0_51, %c0_52] : memref<4x64x16xbf16, #tpu.memory_space<vmem>>, vector<1x64x16xbf16>
    %88 = vector.shape_cast %87 : vector<1x64x16xbf16> to vector<64x16xbf16>
    %cst_53 = arith.constant dense<0.000000e+00> : vector<16x16xf32>
    %89 = tpu.matmul %15, %88, %cst_53 {dimension_numbers = #tpu.dot_dimension_numbers<[1], [0], [0], [1], [0, 0, 1, 1], [], []>} : vector<16x64xbf16>, vector<64x16xbf16>, vector<16x16xf32> -> vector<16x16xf32>
    %c0_54 = arith.constant 0 : index
    %c0_55 = arith.constant 0 : index
    %90 = vector.load %arg9[%c0_54, %c0_55] : memref<1x16xf32, #tpu.memory_space<vmem>>, vector<1x16xf32>
    %91 = arith.mulf %89, %89 : vector<16x16xf32>
    %cst_56 = arith.constant dense<0.000000e+00> : vector<16xf32>
    %92 = vector.multi_reduction <add>, %91, %cst_56 [1] : vector<16x16xf32> to vector<16xf32>
    %93 = vector.shape_cast %92 : vector<16xf32> to vector<16x1xf32>
    %cst_57 = arith.constant 1.600000e+01 : f32
    %94 = vector.broadcast %cst_57 : f32 to vector<16x1xf32>
    %95 = arith.divf %93, %94 : vector<16x1xf32>
    %cst_58 = arith.constant 9.99999974E-6 : f32
    %96 = vector.broadcast %cst_58 : f32 to vector<16x1xf32>
    %97 = arith.addf %95, %96 : vector<16x1xf32>
    %98 = math.rsqrt %97 : vector<16x1xf32>
    %99 = vector.broadcast %98 : vector<16x1xf32> to vector<16x16xf32>
    %100 = arith.mulf %89, %99 : vector<16x16xf32>
    %101 = vector.broadcast %90 : vector<1x16xf32> to vector<16x16xf32>
    %102 = arith.mulf %100, %101 : vector<16x16xf32>
    %103 = arith.mulf %102, %17 : vector<16x16xf32>
    %cst_59 = arith.constant dense<0.000000e+00> : vector<16x16xf32>
    %104 = tpu.matmul %102, %20, %cst_59 {dimension_numbers = #tpu.dot_dimension_numbers<[1], [0], [0], [1], [0, 0, 1, 1], [], []>} : vector<16x16xf32>, vector<16x16xf32>, vector<16x16xf32> -> vector<16x16xf32>
    %105 = arith.mulf %104, %19 : vector<16x16xf32>
    %106 = arith.addf %103, %105 : vector<16x16xf32>
    %107 = arith.truncf %106 : vector<16x16xf32> to vector<16x16xbf16>
    %cst_60 = arith.constant dense<0.000000e+00> : vector<16x16xf32>
    %108 = tpu.matmul %107, %59, %cst_60 {dimension_numbers = #tpu.dot_dimension_numbers<[1], [1], [0], [0], [0, 0, 1, 0], [], []>} : vector<16x16xbf16>, vector<16x16xbf16>, vector<16x16xf32> -> vector<16x16xf32>
    %109 = arith.addf %108, %35 : vector<16x16xf32>
    %cst_61 = arith.constant dense<0xFF800000> : vector<16xf32>
    %110 = vector.multi_reduction <maximumf>, %109, %cst_61 [1] : vector<16x16xf32> to vector<16xf32>
    %111 = vector.shape_cast %110 : vector<16xf32> to vector<16x1xf32>
    %112 = vector.broadcast %111 : vector<16x1xf32> to vector<16x16xf32>
    %113 = arith.subf %109, %112 : vector<16x16xf32>
    %114 = math.exp %113 : vector<16x16xf32>
    %cst_62 = arith.constant dense<0.000000e+00> : vector<16xf32>
    %115 = vector.multi_reduction <add>, %114, %cst_62 [1] : vector<16x16xf32> to vector<16xf32>
    %116 = vector.shape_cast %115 : vector<16xf32> to vector<16x1xf32>
    %117 = arith.truncf %114 : vector<16x16xf32> to vector<16x16xbf16>
    %cst_63 = arith.constant dense<0.000000e+00> : vector<16x16xf32>
    %118 = tpu.matmul %117, %60, %cst_63 {dimension_numbers = #tpu.dot_dimension_numbers<[1], [0], [0], [1], [0, 0, 1, 1], [], []>} : vector<16x16xbf16>, vector<16x16xbf16>, vector<16x16xf32> -> vector<16x16xf32>
    %119 = tpu.reciprocal %116 {approx = true} : vector<16x1xf32> -> vector<16x1xf32>
    %120 = vector.broadcast %119 : vector<16x1xf32> to vector<16x16xf32>
    %121 = arith.mulf %118, %120 : vector<16x16xf32>
    %122 = arith.truncf %121 : vector<16x16xf32> to vector<16x16xbf16>
    %c0_64 = arith.constant 0 : index
    %c0_65 = arith.constant 0 : index
    %c0_66 = arith.constant 0 : index
    %123 = vector.load %arg12[%c0_64, %c0_65, %c0_66] : memref<4x16x64xbf16, #tpu.memory_space<vmem>>, vector<1x16x64xbf16>
    %124 = vector.shape_cast %123 : vector<1x16x64xbf16> to vector<16x64xbf16>
    %cst_67 = arith.constant dense<0.000000e+00> : vector<16x64xf32>
    %125 = tpu.matmul %122, %124, %cst_67 {dimension_numbers = #tpu.dot_dimension_numbers<[1], [0], [0], [1], [0, 0, 1, 1], [], []>} : vector<16x16xbf16>, vector<16x64xbf16>, vector<16x64xf32> -> vector<16x64xf32>
    %126 = arith.addf %86, %125 : vector<16x64xf32>
    %c1_68 = arith.constant 1 : index
    %c0_69 = arith.constant 0 : index
    %c0_70 = arith.constant 0 : index
    %127 = vector.load %arg6[%c1_68, %c0_69, %c0_70] : memref<4x64x16xbf16, #tpu.memory_space<vmem>>, vector<1x64x16xbf16>
    %128 = vector.shape_cast %127 : vector<1x64x16xbf16> to vector<64x16xbf16>
    %cst_71 = arith.constant dense<0.000000e+00> : vector<16x16xf32>
    %129 = tpu.matmul %15, %128, %cst_71 {dimension_numbers = #tpu.dot_dimension_numbers<[1], [0], [0], [1], [0, 0, 1, 1], [], []>} : vector<16x64xbf16>, vector<64x16xbf16>, vector<16x16xf32> -> vector<16x16xf32>
    %c0_72 = arith.constant 0 : index
    %c0_73 = arith.constant 0 : index
    %130 = vector.load %arg9[%c0_72, %c0_73] : memref<1x16xf32, #tpu.memory_space<vmem>>, vector<1x16xf32>
    %131 = arith.mulf %129, %129 : vector<16x16xf32>
    %cst_74 = arith.constant dense<0.000000e+00> : vector<16xf32>
    %132 = vector.multi_reduction <add>, %131, %cst_74 [1] : vector<16x16xf32> to vector<16xf32>
    %133 = vector.shape_cast %132 : vector<16xf32> to vector<16x1xf32>
    %cst_75 = arith.constant 1.600000e+01 : f32
    %134 = vector.broadcast %cst_75 : f32 to vector<16x1xf32>
    %135 = arith.divf %133, %134 : vector<16x1xf32>
    %cst_76 = arith.constant 9.99999974E-6 : f32
    %136 = vector.broadcast %cst_76 : f32 to vector<16x1xf32>
    %137 = arith.addf %135, %136 : vector<16x1xf32>
    %138 = math.rsqrt %137 : vector<16x1xf32>
    %139 = vector.broadcast %138 : vector<16x1xf32> to vector<16x16xf32>
    %140 = arith.mulf %129, %139 : vector<16x16xf32>
    %141 = vector.broadcast %130 : vector<1x16xf32> to vector<16x16xf32>
    %142 = arith.mulf %140, %141 : vector<16x16xf32>
    %143 = arith.mulf %142, %17 : vector<16x16xf32>
    %cst_77 = arith.constant dense<0.000000e+00> : vector<16x16xf32>
    %144 = tpu.matmul %142, %20, %cst_77 {dimension_numbers = #tpu.dot_dimension_numbers<[1], [0], [0], [1], [0, 0, 1, 1], [], []>} : vector<16x16xf32>, vector<16x16xf32>, vector<16x16xf32> -> vector<16x16xf32>
    %145 = arith.mulf %144, %19 : vector<16x16xf32>
    %146 = arith.addf %143, %145 : vector<16x16xf32>
    %147 = arith.truncf %146 : vector<16x16xf32> to vector<16x16xbf16>
    %cst_78 = arith.constant dense<0.000000e+00> : vector<16x16xf32>
    %148 = tpu.matmul %147, %59, %cst_78 {dimension_numbers = #tpu.dot_dimension_numbers<[1], [1], [0], [0], [0, 0, 1, 0], [], []>} : vector<16x16xbf16>, vector<16x16xbf16>, vector<16x16xf32> -> vector<16x16xf32>
    %149 = arith.addf %148, %35 : vector<16x16xf32>
    %cst_79 = arith.constant dense<0xFF800000> : vector<16xf32>
    %150 = vector.multi_reduction <maximumf>, %149, %cst_79 [1] : vector<16x16xf32> to vector<16xf32>
    %151 = vector.shape_cast %150 : vector<16xf32> to vector<16x1xf32>
    %152 = vector.broadcast %151 : vector<16x1xf32> to vector<16x16xf32>
    %153 = arith.subf %149, %152 : vector<16x16xf32>
    %154 = math.exp %153 : vector<16x16xf32>
    %cst_80 = arith.constant dense<0.000000e+00> : vector<16xf32>
    %155 = vector.multi_reduction <add>, %154, %cst_80 [1] : vector<16x16xf32> to vector<16xf32>
    %156 = vector.shape_cast %155 : vector<16xf32> to vector<16x1xf32>
    %157 = arith.truncf %154 : vector<16x16xf32> to vector<16x16xbf16>
    %cst_81 = arith.constant dense<0.000000e+00> : vector<16x16xf32>
    %158 = tpu.matmul %157, %60, %cst_81 {dimension_numbers = #tpu.dot_dimension_numbers<[1], [0], [0], [1], [0, 0, 1, 1], [], []>} : vector<16x16xbf16>, vector<16x16xbf16>, vector<16x16xf32> -> vector<16x16xf32>
    %159 = tpu.reciprocal %156 {approx = true} : vector<16x1xf32> -> vector<16x1xf32>
    %160 = vector.broadcast %159 : vector<16x1xf32> to vector<16x16xf32>
    %161 = arith.mulf %158, %160 : vector<16x16xf32>
    %162 = arith.truncf %161 : vector<16x16xf32> to vector<16x16xbf16>
    %c1_82 = arith.constant 1 : index
    %c0_83 = arith.constant 0 : index
    %c0_84 = arith.constant 0 : index
    %163 = vector.load %arg12[%c1_82, %c0_83, %c0_84] : memref<4x16x64xbf16, #tpu.memory_space<vmem>>, vector<1x16x64xbf16>
    %164 = vector.shape_cast %163 : vector<1x16x64xbf16> to vector<16x64xbf16>
    %cst_85 = arith.constant dense<0.000000e+00> : vector<16x64xf32>
    %165 = tpu.matmul %162, %164, %cst_85 {dimension_numbers = #tpu.dot_dimension_numbers<[1], [0], [0], [1], [0, 0, 1, 1], [], []>} : vector<16x16xbf16>, vector<16x64xbf16>, vector<16x64xf32> -> vector<16x64xf32>
    %166 = arith.addf %126, %165 : vector<16x64xf32>
    %c2 = arith.constant 2 : index
    %c0_86 = arith.constant 0 : index
    %c0_87 = arith.constant 0 : index
    %167 = vector.load %arg6[%c2, %c0_86, %c0_87] : memref<4x64x16xbf16, #tpu.memory_space<vmem>>, vector<1x64x16xbf16>
    %168 = vector.shape_cast %167 : vector<1x64x16xbf16> to vector<64x16xbf16>
    %cst_88 = arith.constant dense<0.000000e+00> : vector<16x16xf32>
    %169 = tpu.matmul %15, %168, %cst_88 {dimension_numbers = #tpu.dot_dimension_numbers<[1], [0], [0], [1], [0, 0, 1, 1], [], []>} : vector<16x64xbf16>, vector<64x16xbf16>, vector<16x16xf32> -> vector<16x16xf32>
    %c0_89 = arith.constant 0 : index
    %c0_90 = arith.constant 0 : index
    %170 = vector.load %arg9[%c0_89, %c0_90] : memref<1x16xf32, #tpu.memory_space<vmem>>, vector<1x16xf32>
    %171 = arith.mulf %169, %169 : vector<16x16xf32>
    %cst_91 = arith.constant dense<0.000000e+00> : vector<16xf32>
    %172 = vector.multi_reduction <add>, %171, %cst_91 [1] : vector<16x16xf32> to vector<16xf32>
    %173 = vector.shape_cast %172 : vector<16xf32> to vector<16x1xf32>
    %cst_92 = arith.constant 1.600000e+01 : f32
    %174 = vector.broadcast %cst_92 : f32 to vector<16x1xf32>
    %175 = arith.divf %173, %174 : vector<16x1xf32>
    %cst_93 = arith.constant 9.99999974E-6 : f32
    %176 = vector.broadcast %cst_93 : f32 to vector<16x1xf32>
    %177 = arith.addf %175, %176 : vector<16x1xf32>
    %178 = math.rsqrt %177 : vector<16x1xf32>
    %179 = vector.broadcast %178 : vector<16x1xf32> to vector<16x16xf32>
    %180 = arith.mulf %169, %179 : vector<16x16xf32>
    %181 = vector.broadcast %170 : vector<1x16xf32> to vector<16x16xf32>
    %182 = arith.mulf %180, %181 : vector<16x16xf32>
    %183 = arith.mulf %182, %17 : vector<16x16xf32>
    %cst_94 = arith.constant dense<0.000000e+00> : vector<16x16xf32>
    %184 = tpu.matmul %182, %20, %cst_94 {dimension_numbers = #tpu.dot_dimension_numbers<[1], [0], [0], [1], [0, 0, 1, 1], [], []>} : vector<16x16xf32>, vector<16x16xf32>, vector<16x16xf32> -> vector<16x16xf32>
    %185 = arith.mulf %184, %19 : vector<16x16xf32>
    %186 = arith.addf %183, %185 : vector<16x16xf32>
    %187 = arith.truncf %186 : vector<16x16xf32> to vector<16x16xbf16>
    %cst_95 = arith.constant dense<0.000000e+00> : vector<16x16xf32>
    %188 = tpu.matmul %187, %84, %cst_95 {dimension_numbers = #tpu.dot_dimension_numbers<[1], [1], [0], [0], [0, 0, 1, 0], [], []>} : vector<16x16xbf16>, vector<16x16xbf16>, vector<16x16xf32> -> vector<16x16xf32>
    %189 = arith.addf %188, %35 : vector<16x16xf32>
    %cst_96 = arith.constant dense<0xFF800000> : vector<16xf32>
    %190 = vector.multi_reduction <maximumf>, %189, %cst_96 [1] : vector<16x16xf32> to vector<16xf32>
    %191 = vector.shape_cast %190 : vector<16xf32> to vector<16x1xf32>
    %192 = vector.broadcast %191 : vector<16x1xf32> to vector<16x16xf32>
    %193 = arith.subf %189, %192 : vector<16x16xf32>
    %194 = math.exp %193 : vector<16x16xf32>
    %cst_97 = arith.constant dense<0.000000e+00> : vector<16xf32>
    %195 = vector.multi_reduction <add>, %194, %cst_97 [1] : vector<16x16xf32> to vector<16xf32>
    %196 = vector.shape_cast %195 : vector<16xf32> to vector<16x1xf32>
    %197 = arith.truncf %194 : vector<16x16xf32> to vector<16x16xbf16>
    %cst_98 = arith.constant dense<0.000000e+00> : vector<16x16xf32>
    %198 = tpu.matmul %197, %85, %cst_98 {dimension_numbers = #tpu.dot_dimension_numbers<[1], [0], [0], [1], [0, 0, 1, 1], [], []>} : vector<16x16xbf16>, vector<16x16xbf16>, vector<16x16xf32> -> vector<16x16xf32>
    %199 = tpu.reciprocal %196 {approx = true} : vector<16x1xf32> -> vector<16x1xf32>
    %200 = vector.broadcast %199 : vector<16x1xf32> to vector<16x16xf32>
    %201 = arith.mulf %198, %200 : vector<16x16xf32>
    %202 = arith.truncf %201 : vector<16x16xf32> to vector<16x16xbf16>
    %c2_99 = arith.constant 2 : index
    %c0_100 = arith.constant 0 : index
    %c0_101 = arith.constant 0 : index
    %203 = vector.load %arg12[%c2_99, %c0_100, %c0_101] : memref<4x16x64xbf16, #tpu.memory_space<vmem>>, vector<1x16x64xbf16>
    %204 = vector.shape_cast %203 : vector<1x16x64xbf16> to vector<16x64xbf16>
    %cst_102 = arith.constant dense<0.000000e+00> : vector<16x64xf32>
    %205 = tpu.matmul %202, %204, %cst_102 {dimension_numbers = #tpu.dot_dimension_numbers<[1], [0], [0], [1], [0, 0, 1, 1], [], []>} : vector<16x16xbf16>, vector<16x64xbf16>, vector<16x64xf32> -> vector<16x64xf32>
    %206 = arith.addf %166, %205 : vector<16x64xf32>
    %c3 = arith.constant 3 : index
    %c0_103 = arith.constant 0 : index
    %c0_104 = arith.constant 0 : index
    %207 = vector.load %arg6[%c3, %c0_103, %c0_104] : memref<4x64x16xbf16, #tpu.memory_space<vmem>>, vector<1x64x16xbf16>
    %208 = vector.shape_cast %207 : vector<1x64x16xbf16> to vector<64x16xbf16>
    %cst_105 = arith.constant dense<0.000000e+00> : vector<16x16xf32>
    %209 = tpu.matmul %15, %208, %cst_105 {dimension_numbers = #tpu.dot_dimension_numbers<[1], [0], [0], [1], [0, 0, 1, 1], [], []>} : vector<16x64xbf16>, vector<64x16xbf16>, vector<16x16xf32> -> vector<16x16xf32>
    %c0_106 = arith.constant 0 : index
    %c0_107 = arith.constant 0 : index
    %210 = vector.load %arg9[%c0_106, %c0_107] : memref<1x16xf32, #tpu.memory_space<vmem>>, vector<1x16xf32>
    %211 = arith.mulf %209, %209 : vector<16x16xf32>
    %cst_108 = arith.constant dense<0.000000e+00> : vector<16xf32>
    %212 = vector.multi_reduction <add>, %211, %cst_108 [1] : vector<16x16xf32> to vector<16xf32>
    %213 = vector.shape_cast %212 : vector<16xf32> to vector<16x1xf32>
    %cst_109 = arith.constant 1.600000e+01 : f32
    %214 = vector.broadcast %cst_109 : f32 to vector<16x1xf32>
    %215 = arith.divf %213, %214 : vector<16x1xf32>
    %cst_110 = arith.constant 9.99999974E-6 : f32
    %216 = vector.broadcast %cst_110 : f32 to vector<16x1xf32>
    %217 = arith.addf %215, %216 : vector<16x1xf32>
    %218 = math.rsqrt %217 : vector<16x1xf32>
    %219 = vector.broadcast %218 : vector<16x1xf32> to vector<16x16xf32>
    %220 = arith.mulf %209, %219 : vector<16x16xf32>
    %221 = vector.broadcast %210 : vector<1x16xf32> to vector<16x16xf32>
    %222 = arith.mulf %220, %221 : vector<16x16xf32>
    %223 = arith.mulf %222, %17 : vector<16x16xf32>
    %cst_111 = arith.constant dense<0.000000e+00> : vector<16x16xf32>
    %224 = tpu.matmul %222, %20, %cst_111 {dimension_numbers = #tpu.dot_dimension_numbers<[1], [0], [0], [1], [0, 0, 1, 1], [], []>} : vector<16x16xf32>, vector<16x16xf32>, vector<16x16xf32> -> vector<16x16xf32>
    %225 = arith.mulf %224, %19 : vector<16x16xf32>
    %226 = arith.addf %223, %225 : vector<16x16xf32>
    %227 = arith.truncf %226 : vector<16x16xf32> to vector<16x16xbf16>
    %cst_112 = arith.constant dense<0.000000e+00> : vector<16x16xf32>
    %228 = tpu.matmul %227, %84, %cst_112 {dimension_numbers = #tpu.dot_dimension_numbers<[1], [1], [0], [0], [0, 0, 1, 0], [], []>} : vector<16x16xbf16>, vector<16x16xbf16>, vector<16x16xf32> -> vector<16x16xf32>
    %229 = arith.addf %228, %35 : vector<16x16xf32>
    %cst_113 = arith.constant dense<0xFF800000> : vector<16xf32>
    %230 = vector.multi_reduction <maximumf>, %229, %cst_113 [1] : vector<16x16xf32> to vector<16xf32>
    %231 = vector.shape_cast %230 : vector<16xf32> to vector<16x1xf32>
    %232 = vector.broadcast %231 : vector<16x1xf32> to vector<16x16xf32>
    %233 = arith.subf %229, %232 : vector<16x16xf32>
    %234 = math.exp %233 : vector<16x16xf32>
    %cst_114 = arith.constant dense<0.000000e+00> : vector<16xf32>
    %235 = vector.multi_reduction <add>, %234, %cst_114 [1] : vector<16x16xf32> to vector<16xf32>
    %236 = vector.shape_cast %235 : vector<16xf32> to vector<16x1xf32>
    %237 = arith.truncf %234 : vector<16x16xf32> to vector<16x16xbf16>
    %cst_115 = arith.constant dense<0.000000e+00> : vector<16x16xf32>
    %238 = tpu.matmul %237, %85, %cst_115 {dimension_numbers = #tpu.dot_dimension_numbers<[1], [0], [0], [1], [0, 0, 1, 1], [], []>} : vector<16x16xbf16>, vector<16x16xbf16>, vector<16x16xf32> -> vector<16x16xf32>
    %239 = tpu.reciprocal %236 {approx = true} : vector<16x1xf32> -> vector<16x1xf32>
    %240 = vector.broadcast %239 : vector<16x1xf32> to vector<16x16xf32>
    %241 = arith.mulf %238, %240 : vector<16x16xf32>
    %242 = arith.truncf %241 : vector<16x16xf32> to vector<16x16xbf16>
    %c3_116 = arith.constant 3 : index
    %c0_117 = arith.constant 0 : index
    %c0_118 = arith.constant 0 : index
    %243 = vector.load %arg12[%c3_116, %c0_117, %c0_118] : memref<4x16x64xbf16, #tpu.memory_space<vmem>>, vector<1x16x64xbf16>
    %244 = vector.shape_cast %243 : vector<1x16x64xbf16> to vector<16x64xbf16>
    %cst_119 = arith.constant dense<0.000000e+00> : vector<16x64xf32>
    %245 = tpu.matmul %242, %244, %cst_119 {dimension_numbers = #tpu.dot_dimension_numbers<[1], [0], [0], [1], [0, 0, 1, 1], [], []>} : vector<16x16xbf16>, vector<16x64xbf16>, vector<16x64xf32> -> vector<16x64xf32>
    %246 = arith.addf %206, %245 : vector<16x64xf32>
    %247 = arith.addf %1, %246 : vector<16x64xf32>
    %c0_120 = arith.constant 0 : index
    %c0_121 = arith.constant 0 : index
    %248 = vector.load %arg13[%c0_120, %c0_121] : memref<1x64xf32, #tpu.memory_space<vmem>>, vector<1x64xf32>
    %249 = arith.mulf %247, %247 : vector<16x64xf32>
    %cst_122 = arith.constant dense<0.000000e+00> : vector<16xf32>
    %250 = vector.multi_reduction <add>, %249, %cst_122 [1] : vector<16x64xf32> to vector<16xf32>
    %251 = vector.shape_cast %250 : vector<16xf32> to vector<16x1xf32>
    %cst_123 = arith.constant 6.400000e+01 : f32
    %252 = vector.broadcast %cst_123 : f32 to vector<16x1xf32>
    %253 = arith.divf %251, %252 : vector<16x1xf32>
    %cst_124 = arith.constant 9.99999974E-6 : f32
    %254 = vector.broadcast %cst_124 : f32 to vector<16x1xf32>
    %255 = arith.addf %253, %254 : vector<16x1xf32>
    %256 = math.rsqrt %255 : vector<16x1xf32>
    %257 = vector.broadcast %256 : vector<16x1xf32> to vector<16x64xf32>
    %258 = arith.mulf %247, %257 : vector<16x64xf32>
    %259 = vector.broadcast %248 : vector<1x64xf32> to vector<16x64xf32>
    %260 = arith.mulf %258, %259 : vector<16x64xf32>
    %c0_125 = arith.constant 0 : index
    %c0_126 = arith.constant 0 : index
    %261 = vector.load %arg14[%c0_125, %c0_126] : memref<64x128xbf16, #tpu.memory_space<vmem>>, vector<64x128xbf16>
    %c0_127 = arith.constant 0 : index
    %c0_128 = arith.constant 0 : index
    %262 = vector.load %arg15[%c0_127, %c0_128] : memref<64x128xbf16, #tpu.memory_space<vmem>>, vector<64x128xbf16>
    %c0_129 = arith.constant 0 : index
    %c0_130 = arith.constant 0 : index
    %263 = vector.load %arg16[%c0_129, %c0_130] : memref<128x64xbf16, #tpu.memory_space<vmem>>, vector<128x64xbf16>
    %264 = arith.truncf %260 : vector<16x64xf32> to vector<16x64xbf16>
    %cst_131 = arith.constant dense<0.000000e+00> : vector<16x128xf32>
    %265 = tpu.matmul %264, %261, %cst_131 {dimension_numbers = #tpu.dot_dimension_numbers<[1], [0], [0], [1], [0, 0, 1, 1], [], []>} : vector<16x64xbf16>, vector<64x128xbf16>, vector<16x128xf32> -> vector<16x128xf32>
    %cst_132 = arith.constant dense<0.000000e+00> : vector<16x128xf32>
    %266 = tpu.matmul %264, %262, %cst_132 {dimension_numbers = #tpu.dot_dimension_numbers<[1], [0], [0], [1], [0, 0, 1, 1], [], []>} : vector<16x64xbf16>, vector<64x128xbf16>, vector<16x128xf32> -> vector<16x128xf32>
    %267 = arith.negf %265 : vector<16x128xf32>
    %268 = math.exp %267 : vector<16x128xf32>
    %cst_133 = arith.constant 1.000000e+00 : f32
    %269 = vector.broadcast %cst_133 : f32 to vector<16x128xf32>
    %270 = arith.addf %269, %268 : vector<16x128xf32>
    %271 = arith.divf %269, %270 : vector<16x128xf32>
    %272 = arith.mulf %265, %271 : vector<16x128xf32>
    %273 = arith.mulf %272, %266 : vector<16x128xf32>
    %274 = arith.truncf %273 : vector<16x128xf32> to vector<16x128xbf16>
    %cst_134 = arith.constant dense<0.000000e+00> : vector<16x64xf32>
    %275 = tpu.matmul %274, %263, %cst_134 {dimension_numbers = #tpu.dot_dimension_numbers<[1], [0], [0], [1], [0, 0, 1, 1], [], []>} : vector<16x128xbf16>, vector<128x64xbf16>, vector<16x64xf32> -> vector<16x64xf32>
    %276 = arith.addf %247, %275 : vector<16x64xf32>
    %c0_135 = arith.constant 0 : index
    %c0_136 = arith.constant 0 : index
    %c0_137 = arith.constant 0 : index
    %277 = vector.load %arg17[%c0_135, %c0_136, %c0_137] : memref<1x16x64xf32, #tpu.memory_space<vmem>>, vector<1x16x64xf32>
    %278 = vector.shape_cast %277 : vector<1x16x64xf32> to vector<16x64xf32>
    %279 = vector.shape_cast %276 : vector<16x64xf32> to vector<1x16x64xf32>
    tpu.vector_store %arg17[%c0_135, %c0_136, %c0_137], %279 {strides = array<i32>} : memref<1x16x64xf32, #tpu.memory_space<vmem>>, vector<1x16x64xf32>,
    return
  }
  func.func @transform_0(%arg0: i32) -> (i32, i32, i32) {
    %c0_i32 = arith.constant 0 : i32
    %c0_i32_0 = arith.constant 0 : i32
    %c0_i32_1 = arith.constant 0 : i32
    return %arg0, %c0_i32, %c0_i32_0 : i32, i32, i32
  }
  func.func @transform_1(%arg0: i32) -> (i32, i32, i32) {
    %c0_i32 = arith.constant 0 : i32
    %c0_i32_0 = arith.constant 0 : i32
    %c0_i32_1 = arith.constant 0 : i32
    return %arg0, %c0_i32, %c0_i32_0 : i32, i32, i32
  }
  func.func @transform_2(%arg0: i32) -> (i32, i32, i32) {
    %c0_i32 = arith.constant 0 : i32
    %c0_i32_0 = arith.constant 0 : i32
    %c0_i32_1 = arith.constant 0 : i32
    return %arg0, %c0_i32, %c0_i32_0 : i32, i32, i32
  }
  func.func @transform_3(%arg0: i32) -> (i32, i32, i32) {
    %c0_i32 = arith.constant 0 : i32
    %c0_i32_0 = arith.constant 0 : i32
    %c0_i32_1 = arith.constant 0 : i32
    return %arg0, %c0_i32, %c0_i32_0 : i32, i32, i32
  }
  func.func @transform_4(%arg0: i32) -> (i32, i32) {
    %c0_i32 = arith.constant 0 : i32
    %c0_i32_0 = arith.constant 0 : i32
    %c0_i32_1 = arith.constant 0 : i32
    return %c0_i32, %c0_i32_0 : i32, i32
  }
  func.func @transform_5(%arg0: i32) -> (i32, i32, i32) {
    %c0_i32 = arith.constant 0 : i32
    %c0_i32_0 = arith.constant 0 : i32
    %c0_i32_1 = arith.constant 0 : i32
    %c0_i32_2 = arith.constant 0 : i32
    return %c0_i32, %c0_i32_0, %c0_i32_1 : i32, i32, i32
  }
  func.func @transform_6(%arg0: i32) -> (i32, i32, i32) {
    %c0_i32 = arith.constant 0 : i32
    %c0_i32_0 = arith.constant 0 : i32
    %c0_i32_1 = arith.constant 0 : i32
    %c0_i32_2 = arith.constant 0 : i32
    return %c0_i32, %c0_i32_0, %c0_i32_1 : i32, i32, i32
  }
  func.func @transform_7(%arg0: i32) -> (i32, i32, i32) {
    %c0_i32 = arith.constant 0 : i32
    %c0_i32_0 = arith.constant 0 : i32
    %c0_i32_1 = arith.constant 0 : i32
    %c0_i32_2 = arith.constant 0 : i32
    return %c0_i32, %c0_i32_0, %c0_i32_1 : i32, i32, i32
  }
  func.func @transform_8(%arg0: i32) -> (i32, i32) {
    %c0_i32 = arith.constant 0 : i32
    %c0_i32_0 = arith.constant 0 : i32
    %c0_i32_1 = arith.constant 0 : i32
    return %c0_i32, %c0_i32_0 : i32, i32
  }
  func.func @transform_9(%arg0: i32) -> (i32, i32) {
    %c0_i32 = arith.constant 0 : i32
    %c0_i32_0 = arith.constant 0 : i32
    %c0_i32_1 = arith.constant 0 : i32
    return %c0_i32, %c0_i32_0 : i32, i32
  }
  func.func @transform_10(%arg0: i32) -> (i32, i32) {
    %c0_i32 = arith.constant 0 : i32
    %c0_i32_0 = arith.constant 0 : i32
    %c0_i32_1 = arith.constant 0 : i32
    return %c0_i32, %c0_i32_0 : i32, i32
  }
  func.func @transform_11(%arg0: i32) -> (i32, i32, i32) {
    %c0_i32 = arith.constant 0 : i32
    %c0_i32_0 = arith.constant 0 : i32
    %c0_i32_1 = arith.constant 0 : i32
    %c0_i32_2 = arith.constant 0 : i32
    return %c0_i32, %c0_i32_0, %c0_i32_1 : i32, i32, i32
  }
  func.func @transform_12(%arg0: i32) -> (i32, i32) {
    %c0_i32 = arith.constant 0 : i32
    %c0_i32_0 = arith.constant 0 : i32
    %c0_i32_1 = arith.constant 0 : i32
    return %c0_i32, %c0_i32_0 : i32, i32
  }
  func.func @transform_13(%arg0: i32) -> (i32, i32) {
    %c0_i32 = arith.constant 0 : i32
    %c0_i32_0 = arith.constant 0 : i32
    %c0_i32_1 = arith.constant 0 : i32
    return %c0_i32, %c0_i32_0 : i32, i32
  }
  func.func @transform_14(%arg0: i32) -> (i32, i32) {
    %c0_i32 = arith.constant 0 : i32
    %c0_i32_0 = arith.constant 0 : i32
    %c0_i32_1 = arith.constant 0 : i32
    return %c0_i32, %c0_i32_0 : i32, i32
  }
  func.func @transform_15(%arg0: i32) -> (i32, i32) {
    %c0_i32 = arith.constant 0 : i32
    %c0_i32_0 = arith.constant 0 : i32
    %c0_i32_1 = arith.constant 0 : i32
    return %c0_i32, %c0_i32_0 : i32, i32
  }
  func.func @transform_16(%arg0: i32) -> (i32, i32, i32) {
    %c0_i32 = arith.constant 0 : i32
    %c0_i32_0 = arith.constant 0 : i32
    %c0_i32_1 = arith.constant 0 : i32
    return %arg0, %c0_i32, %c0_i32_0 : i32, i32, i32
  }
}

</mosaic_0001>

<bundles_post_ra>
// kernel: lfm2_forward.5
= control target key start
LH: loop header
LB: loop body
LE: loop exit
PB: predicated region body
PF: predicated region fallthrough
CT: control target
= control target key end

     0   :  { %7 = vsyncpa [#allocation3], 0  ;;  %s498_s0 = inlined_call_operand.vmem [shape: f32[2,16,64], index: 0, kind: input, shape index: {}]   ;;  %s499_s1 = inlined_call_operand.vmem [shape: f32[1,64], index: 1, kind: input, shape index: {}]   ;;  %s500_s2 = inlined_call_operand.hbm [shape: f32[2,16,64], index: 2, kind: output, shape index: {}]  }
   0x1   :  { %9 = vsyncpa [#allocation3 + $0x1], 0  ;;  %s389_s9 = smov 0   ;;  %s391_s10 = smov 0  }
   0x2   :  { %s393_s11 = smov 0   ;;  %s395_s12 = smov 0  }
   0x3 LB: > { %s410_s13 = sadd.s32 4294967295, %s369_s12   ;;  %s249_s14 = sadd.s32 4294967294, %s369_s12   ;;  %s369_s12 = sphi %s395_s12, %s506_s12   ;;  %s365_s11 = sphi %s393_s11, %s505_s11   ;;  %s361_s10 = sphi %s391_s10, %s504_s10   ;;  %s357_s9 = sphi %s389_s9, %s503_s9  }
   0x4   : > { %s414_s15 = sadd.s32 1, %s369_s12   ;;  %s69_s16 = sadd.s32 1, %s365_s11 }
   0x5   : > { %s66_s17 = ssub.s32 %s369_s12, %s414_s15  ;;  %p79_p0 = scmp.ne.s32.totalorder %s365_s11, %s361_s10 }
   0x6   : > { %p67_p1 = scmp.eq.s32.totalorder %s66_s17, 0  ;;  %p80_p2 = scmp.eq.s32.totalorder %s410_s13, 1 }
   0x7   : > { %p85_p3 = scmp.ne.s32.totalorder %s361_s10, %s357_s9  ;;  %p86_p4 = scmp.eq.s32.totalorder %s249_s14, 1 }
   0x8   : > { %s425_s18 = scalar_select %p67_p1, %s365_s11, %s69_s16  }
   0x9   : > { %p427_p5 = por %p80_p2, %p79_p0  ;;  %p431_p6 = por %p86_p4, %p85_p3 }
   0xa   : > { %p252_p7 = scmp.ge.s32.totalorder %s369_s12, 1  ;;  %p115_p8 = scmp.lt.s32.totalorder %s369_s12, 3 }
   0xc   : > { %p116_p9 = pnand %p252_p7, %p115_p8 }
   0xd   : > { %p137_p10 = scmp.lt.s32.totalorder (!%p116_p9), %s410_s13, 1  ;;  %s134_s26 = sand.u32 (!%p116_p9), 1, %s361_s10  }
   0xe   : > { %119 = sbr.rel (%p116_p9) target bundleno = 205 (0xcd), region = 28  ;;  %s253_s27 = sshll.u32 (!%p116_p9), %s134_s26, 4 }
   0xf   : > { %s263_s30 = sshll.u32 (!%p116_p9), %s410_s13, 8  ;;  %s136_s3 = scalar_lea.vmem (!%p116_p9), [#allocation2], %s253_s27 }
  0x10   : > { %s187_s4 = sshll.u32 (!%p116_p9), %s136_s3, 4  ;;  %s453_s7 = scalar_lea.hbm (!%p116_p9), %s500_s2, %s263_s30  ;;  %s455_s4 = int_to_ptr.vmem [resolvable:$true] %s187_s4 }
  0x11   : > { %s458_s8 = scalar_lea.sflag (!%p116_p9), [#allocation3], %s134_s26  ;;  %s371_s14 = smov (!%p116_p9), [#allocation2]  }
  0x12   : > { %s313_s16 = sshll.u32 (!%p116_p9), %s371_s14, 4  ;;  %s314_s16 = int_to_ptr.vmem [resolvable:$false] %s313_s16 }
  0x13   : > { %s138_s21 = scalar_select %p137_p10, %s410_s13, 1  ;;  %vm147_vm0 = vcmask 523264   ;;  %v256_v13 = vld [vmem:[%s499_s1] ss:$0 sm:$0xff] }
  0x14   : > { %s309_s13 = scalar_lea.vmem %s455_s4, 256  ;;  %s315_s17 = scalar_lea.vmem %s314_s16, 512 }
  0x15   : > { %s262_s22 = sshll.u32 %s138_s21, 4  ;;  %p310_p11 = scmp.ne.s32.totalorder %s455_s4, %s309_s13 }
  0x16   : > { %s141_s25 = scalar_lea.vmem %s498_s0, %s262_s22  ;;  %p316_p0 = scmp.lt.s32.totalorder %s455_s4, %s314_s16 }
  0x17   : > { %v142_v0 = vld [vmem:[%s141_s25] sm:$0xff]  ;;  %v143_v1 = vld [vmem:[%s141_s25 + $0x8] sm:$0xff]  ;;  %p311_p12 = pnand %p310_p11, %p427_p5  ;;  %p317_p1 = scmp.lt.s32.totalorder %s315_s17, %s309_s13 }
  0x18   : > { %v145_v2 = vmul.f32 %v142_v0, %v142_v0  ;;  %v146_v3 = vmul.f32 %v143_v1, %v143_v1 }
  0x19   : > { %p312_p13 = pneg %p311_p12  ;;  %p318_p2 = por %p317_p1, %p316_p0 }
  0x1a   : > { %v148_v4 = vsel %vm147_vm0, %v145_v2, 0.0  ;;  %v151_v5 = vsel %vm147_vm0, %v146_v3, 0.0 }
  0x1b   : > { %149 = vadd.xlane.f32.xlu0 %v148_v4  ;;  %p319_p3 = pnand %p318_p2, %p312_p13 }
  0x1f   : > { %152 = vadd.xlane.f32.xlu0 %v151_v5 }
  0xa4   : > { %v150_v6 = vpop.xlane.xlu0 %149 }
  0xa5   : > { %v155_v7 = vmul.f32 0.015625, %v150_v6 }
  0xa7   : > { %v157_v8 = vadd.f32 1e-05, %v155_v7 }
  0xa8   : > { %v153_v9 = vpop.xlane.xlu0 %152 }
  0xa9   : > { %305 = vrsqrt.f32 %v157_v8  ;;  %v156_v10 = vmul.f32 0.015625, %v153_v9 }
  0xab   : > { %v158_v11 = vadd.f32 1e-05, %v156_v10 }
  0xad   : > { %307 = vrsqrt.f32 %v158_v11 }
  0xb6   : > { %v306_v12 = vpop.eup %305 }
  0xb7   : > { %v161_v14 = vmul.f32 %v306_v12, %v142_v0 }
  0xb9   : > { %v169_v15 = vmul.f32 %v256_v13, %v161_v14 }
  0xba   : > { %v308_v16 = vpop.eup %307 }
  0xbb   : > { %v162_v17 = vmul.f32 %v308_v16, %v143_v1  ;;  %171 = vst.msk [vmem:[%s136_s3] sm:$0xff] %vm147_vm0, %v169_v15 }
  0xbd   : > { %v170_v18 = vmul.f32 %v256_v13, %v162_v17 }
  0xbf   : > { %172 = vst.msk [vmem:[%s136_s3 + $0x8] sm:$0xff] %vm147_vm0, %v170_v18 }
  0xc0   : > { %322 = shalt.err (!%p319_p3)
}
  0xc1   : > { %s323_s21 = scalar_lea.hbm %s453_s7, 256  ;;  %s327_s24 = scalar_lea.hbm %s500_s2, 512 }
  0xc2   : > { %p324_p4 = scmp.ne.s32.totalorder %s453_s7, %s323_s21  ;;  %p328_p9 = scmp.lt.s32.totalorder %s453_s7, %s500_s2 }
  0xc3   : > { %p329_p10 = scmp.lt.s32.totalorder %s327_s24, %s323_s21 }
  0xc4   : > { %p325_p7 = pnand %p324_p4, %p427_p5 }
  0xc5   : > { %p330_p11 = por %p329_p10, %p328_p9 }
  0xc6   : > { %p326_p8 = pneg %p325_p7 }
  0xc8   : > { %p331_p12 = pnand %p330_p11, %p326_p8 }
  0xca   : > { %334 = shalt.err (!%p331_p12)
}
  0xcb   : > { %s372_s27 = smov 128   ;;  %s373_s28 = smov 8  }
  0xcc   : > { %264 = dma.vmem_to_hbm [thread:$0]  (%p427_p5), %s455_s4, 256, %s453_s7, %s458_s8, %s372_s27, %s372_s27, %s373_s28  }
  0xcd PF: > { %p270_p13 = scmp.ge.s32.totalorder %s369_s12, 2  ;;  %s202_s29 = sand.u32 1, %s357_s9  }
  0xce   : > { %s203_s30 = scalar_lea.sflag [#allocation3], %s202_s29 }
  0xcf   : > { %p267_p0 = pnand %p270_p13, %p431_p6 }
  0xd1   : > { %p268_p1 = pneg %p267_p0 }
  0xd3   : > { %352 = dma.done.wait (%p268_p1), %s203_s30, 256  }
  0xd4   : > { %354 = vsyncadd (%p268_p1), %s203_s30, 4294967040  ;;  %p12_p2 = scmp.ge.s32.totalorder %s414_s15, 4   ;;  %s503_s9 = smov %s361_s10 }
  0xd5   : > { %s504_s10 = smov %s365_s11  ;;  %s505_s11 = smov %s425_s18 }
  0xd6   : > { %s506_s12 = smov %s414_s15  ;;  %14 = sbr.rel (!%p12_p2) target bundleno = 3 (0x3), region = 63 }
  0xdb   :  { %208 = vsyncpa [#allocation3], 1 }
  0xdc   :  { %210 = vsyncpa [#allocation3 + $0x1], 1 }

// kernel: lfm2_forward.3
= control target key start
LH: loop header
LB: loop body
LE: loop exit
PB: predicated region body
PF: predicated region fallthrough
CT: control target
= control target key end

     0   :  { %s1396_s30 = smov 0   ;;  %s1615_s0 = inlined_call_operand.vmem [shape: f32[2,16,64], index: 0, kind: input, shape index: {}]   ;;  %s1616_s1 = inlined_call_operand.vmem [shape: f32[1,64], index: 1, kind: input, shape index: {}]   ;;  %s1617_s2 = inlined_call_operand.vmem [shape: bf16[3,64,64], index: 2, kind: input, shape index: {}]   ;;  %s1618_s3 = inlined_call_operand.vmem [shape: f32[3,64], index: 3, kind: input, shape index: {}]   ;;  %s1619_s4 = inlined_call_operand.vmem [shape: bf16[64,64], index: 4, kind: input, shape index: {}]   ;;  %s1620_s5 = inlined_call_operand.vmem [shape: f32[1,64], index: 5, kind: input, shape index: {}]   ;;  %s1621_s6 = inlined_call_operand.vmem [shape: bf16[64,128], index: 6, kind: input, shape index: {}]   ;;  %s1622_s7 = inlined_call_operand.vmem [shape: bf16[64,128], index: 7, kind: input, shape index: {}]   ;;  %s1623_s8 = inlined_call_operand.vmem [shape: bf16[128,64], index: 8, kind: input, shape index: {}]   ;;  %s1624_s9 = inlined_call_operand.vmem [shape: f32[2,16,64], index: 9, kind: output, shape index: {}]  }
   0x1 LB: > { %s1073_s10 = sadd.s32 4294967295, %s1342_s30   ;;  %p1077_p0 = scmp.ge.s32.totalorder %s1342_s30, 1  ;;  %s1342_s30 = sphi %s1396_s30, %s19_s30  }
   0x2   : > { %p287_p1 = scmp.lt.s32.totalorder %s1342_s30, 3 }
   0x4   : > { %p288_p2 = pnand %p1077_p0, %p287_p1 }
   0x5   : > { %p323_p3 = scmp.lt.s32.totalorder (!%p288_p2), %s1073_s10, 1 }
   0x6   : > { %291 = sbr.rel (%p288_p2) target bundleno = 1200 (0x4b0), region = 56 }
   0xb   : > { %s1626_s10 = smov (!%p323_p3, %s1073_s10), 1  ;;  %vm339_vm0 = vcmask 523264   ;;  %v1288_v6 = vld [vmem:[%s1617_s2 + $0x18] sm:$0xff]   ;;  %v1344_v8 = vmov 0.0   ;;  %v1290_v9 = vld [vmem:[%s1617_s2 + $0x10] sm:$0xff]   ;;  %vm1345_vm1 = vmmov 0   ;;  %v590_v37 = vlaneseq }
   0xc   : > { %s1145_s11 = sshll.u32 %s1626_s10, 4  ;;  %v1289_v7 = vld [vmem:[%s1617_s2 + $0x58] sm:$0xff]   ;;  %1186 = vmatprep.subr.bf16.mxu1 %v1344_v8  ;;  %1210 = vmatprep.subr.bf16.mxu0 %v1344_v8  ;;  %v1291_v10 = vld [vmem:[%s1617_s2 + $0x50] sm:$0xff]   ;;  %v1292_v11 = vld [vmem:[%s1617_s2 + $0x8] sm:$0xff]  }
   0xd   : > { %s327_s14 = scalar_lea.vmem %s1615_s0, %s1145_s11  ;;  %1187 = vmatpush3.bf16.msra.mxu1 %v1288_v6  ;;  %1211 = vmatpush3.bf16.msra.mxu0 %v1289_v7  ;;  %v1293_v12 = vld [vmem:[%s1617_s2 + $0x48] sm:$0xff]   ;;  %v1294_v13 = vld [vmem:[%s1617_s2] sm:$0xff]   ;;  %v1296_v28 = vld [vmem:[%s1617_s2 + $0x38] sm:$0xff]   ;;  %v591_v42 = vshrl.u32 %v590_v37, 7  ;;  %s332_s19 = scalar_lea.vmem %s1624_s9, %s1145_s11 }
   0xe   : > { %v1412_v0 = vld [vmem:[%s327_s14] sm:$0xff]  ;;  %v1414_v1 = vld [vmem:[%s327_s14 + $0x8] sm:$0xff]  ;;  %1188 = vmatprep.subr.bf16.mxu1 %v1344_v8  ;;  %1212 = vmatprep.subr.bf16.mxu0 %v1344_v8  ;;  %v1297_v30 = vld [vmem:[%s1617_s2 + $0x30] sm:$0xff]  }
   0xf   : > { %v337_v2 = vmul.f32 %v1412_v0, %v1412_v0  ;;  %v338_v3 = vmul.f32 %v1414_v1, %v1414_v1  ;;  %1194 = vmatprep.mubr.msk.bf16.mxu1 %vm1345_vm1, %v1344_v8  ;;  %1218 = vmatprep.mubr.msk.bf16.mxu0 %vm1345_vm1, %v1344_v8  ;;  %v1295_v14 = vld [vmem:[%s1617_s2 + $0x40] sm:$0xff]   ;;  %v1298_v31 = vld [vmem:[%s1617_s2 + $0x28] sm:$0xff]   ;;  %v1300_v33 = vld [vmem:[%s1619_s4 + $0x18] sm:$0xff]   ;;  %vm602_vm2 = vcmp.lt.s32.totalorder %v591_v42, 2  ;;  %vm605_vm3 = vcmp.ge.s32.totalorder %v591_v42, 2 }
  0x10   : > { %v1082_v24 = vld [vmem:[%s1616_s1] ss:$0 sm:$0xff]  ;;  %v1301_v34 = vld [vmem:[%s1619_s4 + $0x10] sm:$0xff]   ;;  %v1302_v35 = vld [vmem:[%s1619_s4 + $0x8] sm:$0xff]   ;;  %vm620_vm4 = vcmp.lt.s32.totalorder %v591_v42, 1  ;;  %vm623_vm5 = vcmp.ge.s32.totalorder %v591_v42, 1 }
  0x11   : > { %v340_v4 = vsel %vm339_vm0, %v337_v2, 0.0  ;;  %v343_v5 = vsel %vm339_vm0, %v338_v3, 0.0  ;;  %1189 = vmatpush3.bf16.msra.mxu1 %v1290_v9  ;;  %1213 = vmatpush3.bf16.msra.mxu0 %v1291_v10  ;;  %v1299_v32 = vld [vmem:[%s1617_s2 + $0x20] sm:$0xff]  }
  0x12   : > { %341 = vadd.xlane.f32.xlu0 %v340_v4  ;;  %1190 = vmatprep.subr.bf16.mxu1 %v1344_v8  ;;  %v1303_v36 = vld [vmem:[%s1619_s4] sm:$0xff]  }
  0x13   : > { %1214 = vmatprep.subr.bf16.mxu0 %v1344_v8  ;;  %v1114_v53 = vld [vmem:[%s1618_s3 + $0x2] ss:$0 sm:$0xff]  ;;  %v1115_v54 = vld [vmem:[%s1618_s3] ss:$0 sm:$0xff]  ;;  %v1116_v63 = vld [vmem:[%s1618_s3 + $0x1] ss:$0 sm:$0xff] }
  0x15   : > { %1191 = vmatpush3.bf16.msra.mxu1 %v1292_v11  ;;  %1215 = vmatpush3.bf16.msra.mxu0 %v1293_v12 }
  0x16   : > { %344 = vadd.xlane.f32.xlu0 %v343_v5  ;;  %1192 = vmatprep.subr.bf16.mxu1 %v1344_v8 }
  0x17   : > { %1216 = vmatprep.subr.bf16.mxu0 %v1344_v8 }
  0x19   : > { %1193 = vmatpush3.bf16.msra.mxu1 %v1294_v13  ;;  %1217 = vmatpush3.bf16.msra.mxu0 %v1295_v14 }
  0x1a   : > { %1198 = vmatprep.subr.bf16.mxu1 %v1344_v8  ;;  %1234 = vmatprep.subr.bf16.mxu0 %v1344_v8 }
  0x9b   : > { %v342_v15 = vpop.xlane.xlu0 %341 }
  0x9c   : > { %v347_v16 = vmul.f32 0.015625, %v342_v15 }
  0x9e   : > { %v349_v17 = vadd.f32 1e-05, %v347_v16 }
  0x9f   : > { %v345_v18 = vpop.xlane.xlu0 %344 }
  0xa0   : > { %1320 = vrsqrt.f32 %v349_v17  ;;  %v348_v19 = vmul.f32 0.015625, %v345_v18 }
  0xa2   : > { %v350_v20 = vadd.f32 1e-05, %v348_v19 }
  0xa4   : > { %1322 = vrsqrt.f32 %v350_v20 }
  0xad   : > { %v1321_v21 = vpop.eup %1320 }
  0xae   : > { %v353_v22 = vmul.f32 %v1321_v21, %v1412_v0 }
  0xb0   : > { %v361_v26 = vmul.f32 %v1082_v24, %v353_v22 }
  0xb1   : > { %v1323_v23 = vpop.eup %1322 }
  0xb2   : > { %v354_v25 = vmul.f32 %v1323_v23, %v1414_v1 }
  0xb4   : > { %v362_v27 = vmul.f32 %v1082_v24, %v354_v25 }
  0xb6   : > { %v363_v29 = vpack.c.bf16 %v362_v27, %v361_v26 }
  0xb8   : > { %1195 = vmatmul.mubr.msk.bf16.vlgmr.msra.gmra.mxu1 %vm339_vm0, %v363_v29  ;;  %1219 = vmatmul.mubr.msk.bf16.vlgmr.msra.gmra.mxu0 %vm339_vm0, %v363_v29 }
  0xb9   : > { %1199 = vmatpush3.bf16.msra.mxu1 %v1296_v28  ;;  %1206 = vmatprep.mubr.msk.bf16.mxu1 %vm1345_vm1, %v1344_v8  ;;  %v1305_v28 = vld [vmem:[%s1622_s7 + $0x18] sm:$0xff]  }
  0xba   : > { %1200 = vmatprep.subr.bf16.mxu1 %v1344_v8  ;;  %1242 = vmatprep.mubr.msk.bf16.mxu0 %vm1345_vm1, %v1344_v8 }
  0xbd   : > { %1201 = vmatpush3.bf16.msra.mxu1 %v1297_v30  ;;  %v1308_v30 = vld [vmem:[%s1621_s6 + $0x8] sm:$0xff]  }
  0xbe   : > { %1202 = vmatprep.subr.bf16.mxu1 %v1344_v8 }
  0xc1   : > { %1203 = vmatpush3.bf16.msra.mxu1 %v1298_v31  ;;  %v1309_v31 = vld [vmem:[%s1622_s7 + $0x8] sm:$0xff]  }
  0xc2   : > { %1204 = vmatprep.subr.bf16.mxu1 %v1344_v8 }
  0xc5   : > { %1205 = vmatpush3.bf16.msra.mxu1 %v1299_v32  ;;  %v1310_v32 = vld [vmem:[%s1621_s6] sm:$0xff]  }
  0xc6   : > { %1222 = vmatprep.subr.bf16.mxu1 %v1344_v8 }
  0xc8   : > { %1207 = vmatmul.mubr.msk.bf16.vlgmr.msra.gmra.mxu1 %vm339_vm0, %v363_v29  ;;  %v1307_v29 = vld [vmem:[%s1622_s7 + $0x10] sm:$0xff]  }
  0xc9   : > { %1230 = vmatprep.mubr.msk.bf16.mxu1 %vm1345_vm1, %v1344_v8  ;;  %1223 = vmatpush3.bf16.msra.mxu1 %v1300_v33  ;;  %v1311_v33 = vld [vmem:[%s1622_s7] sm:$0xff]  }
  0xca   : > { %1224 = vmatprep.subr.bf16.mxu1 %v1344_v8 }
  0xcd   : > { %1225 = vmatpush3.bf16.msra.mxu1 %v1301_v34 }
  0xce   : > { %1226 = vmatprep.subr.bf16.mxu1 %v1344_v8 }
  0xd1   : > { %1227 = vmatpush3.bf16.msra.mxu1 %v1302_v35 }
  0xd2   : > { %1228 = vmatprep.subr.bf16.mxu1 %v1344_v8 }
  0xd5   : > { %1229 = vmatpush3.bf16.msra.mxu1 %v1303_v36 }
  0xd6   : > { %1246 = vmatprep.subr.bf16.mxu1 %v1344_v8 }
 0x178   : > { %v433_v38 = vpop.f32.mrf.mxu1  ;;  %v581_v39 = vpop.f32.mrf.mxu0 }
 0x179   : > { %v588_v43 = vmul.f32 %v581_v39, %v433_v38 }
 0x17a   : > { %v1196_v40 = vpop.f32.mrf.mxu1  ;;  %v1220_v41 = vpop.f32.mrf.mxu0 }
 0x17b   : > { %v600_v49 = vrot.slane %v588_v43, 6  ;;  %v618_v50 = vrot.slane %v588_v43, 7  ;;  %v598_v59 = vmul.f32 %v1114_v53, %v588_v43  ;;  %v1122_v43 = vld [vmem:[%s1620_s5] ss:$0 sm:$0xff] }
 0x17c   : > { %v436_v44 = vpop.f32.mrf.mxu1  ;;  %v584_v45 = vpop.f32.mrf.mxu0 }
 0x17d   : > { %v589_v46 = vmul.f32 %v584_v45, %v436_v44 }
 0x17e   : > { %v1197_v47 = vpop.f32.mrf.mxu1  ;;  %v1221_v48 = vpop.f32.mrf.mxu0 }
 0x17f   : > { %v601_v51 = vrot.slane %v589_v46, 6  ;;  %v619_v52 = vrot.slane %v589_v46, 7  ;;  %v599_v2 = vmul.f32 %v1114_v53, %v589_v46  ;;  %v1312_v48 = vld [vmem:[%s1623_s8 + $0x38] sm:$0xff]   ;;  %v1317_v53 = vld [vmem:[%s1623_s8 + $0x10] sm:$0xff]  }
 0x181   : > { %v604_v55 = vsel %vm602_vm2, %v601_v51, %v600_v49  ;;  %v622_v56 = vsel %vm620_vm4, %v619_v52, %v618_v50  ;;  %v603_v57 = vsel %vm602_vm2, %v600_v49, %v601_v51  ;;  %v621_v4 = vsel %vm620_vm4, %v618_v50, %v619_v52  ;;  %v1313_v49 = vld [vmem:[%s1623_s8 + $0x30] sm:$0xff]   ;;  %v1314_v50 = vld [vmem:[%s1623_s8 + $0x28] sm:$0xff]   ;;  %v1315_v51 = vld [vmem:[%s1623_s8 + $0x20] sm:$0xff]  }
 0x182   : > { %v607_v58 = vsel %vm605_vm3, %v604_v55, 0.0  ;;  %v615_v61 = vmul.f32 %v1115_v54, %v603_v57  ;;  %v625_v62 = vsel %vm623_vm5, %v622_v56, 0.0  ;;  %v633_v10 = vmul.f32 %v1116_v63, %v621_v4  ;;  %v1316_v52 = vld [vmem:[%s1623_s8 + $0x18] sm:$0xff]   ;;  %v1319_v55 = vld [vmem:[%s1623_s8] sm:$0xff]  }
 0x183   : > { %v614_v60 = vmul.f32 %v1115_v54, %v607_v58  ;;  %v632_v5 = vmul.f32 %v1116_v63, %v625_v62  ;;  %v1318_v54 = vld [vmem:[%s1623_s8 + $0x8] sm:$0xff]  }
 0x184   : > { %v617_v6 = vadd.f32 %v615_v61, %v599_v2 }
 0x185   : > { %v616_v3 = vadd.f32 %v614_v60, %v598_v59 }
 0x186   : > { %v635_v12 = vadd.f32 %v633_v10, %v617_v6 }
 0x187   : > { %v634_v9 = vadd.f32 %v632_v5, %v616_v3 }
 0x188   : > { %v507_v7 = vpop.f32.mrf.mxu1 }
 0x189   : > { %v636_v14 = vmul.f32 %v634_v9, %v507_v7 }
 0x18a   : > { %v1208_v11 = vpop.f32.mrf.mxu1 }
 0x18c   : > { %v510_v13 = vpop.f32.mrf.mxu1 }
 0x18d   : > { %v637_v15 = vmul.f32 %v635_v12, %v510_v13 }
 0x18e   : > { %v1209_v16 = vpop.f32.mrf.mxu1 }
 0x18f   : > { %v638_v17 = vpack.c.bf16 %v637_v15, %v636_v14 }
 0x191   : > { %1231 = vmatmul.mubr.msk.bf16.vlgmr.msra.gmra.mxu1 %vm339_vm0, %v638_v17 }
 0x192   : > { %1254 = vmatprep.mubr.msk.bf16.mxu1 %vm1345_vm1, %v1344_v8  ;;  %1247 = vmatpush3.bf16.msra.mxu1 %v1305_v28 }
 0x193   : > { %1248 = vmatprep.subr.bf16.mxu1 %v1344_v8 }
 0x196   : > { %1249 = vmatpush3.bf16.msra.mxu1 %v1307_v29 }
 0x197   : > { %1250 = vmatprep.subr.bf16.mxu1 %v1344_v8 }
 0x19a   : > { %1251 = vmatpush3.bf16.msra.mxu1 %v1309_v31 }
 0x19b   : > { %1252 = vmatprep.subr.bf16.mxu1 %v1344_v8 }
 0x19e   : > { %1253 = vmatpush3.bf16.msra.mxu1 %v1311_v33 }
 0x251   : > { %v708_v18 = vpop.f32.mrf.mxu1 }
 0x252   : > { %v1521_v19 = vadd.f32 %v708_v18, %v1412_v0  ;;  %v1304_v0 = vld [vmem:[%s1621_s6 + $0x18] sm:$0xff]  }
 0x253   : > { %v1232_v20 = vpop.f32.mrf.mxu1  ;;  %1235 = vmatpush3.bf16.msra.mxu0 %v1304_v0 }
 0x254   : > { %v718_v21 = vmul.f32 %v1521_v19, %v1521_v19  ;;  %1236 = vmatprep.subr.bf16.mxu0 %v1344_v8 }
 0x255   : > { %v711_v22 = vpop.f32.mrf.mxu1 }
 0x256   : > { %v1526_v23 = vadd.f32 %v711_v22, %v1414_v1  ;;  %v720_v24 = vsel %vm339_vm0, %v718_v21, 0.0  ;;  %v1306_v1 = vld [vmem:[%s1621_s6 + $0x10] sm:$0xff]  }
 0x257   : > { %721 = vadd.xlane.f32.xlu1 %v720_v24  ;;  %v1233_v25 = vpop.f32.mrf.mxu1  ;;  %1237 = vmatpush3.bf16.msra.mxu0 %v1306_v1 }
 0x258   : > { %v719_v26 = vmul.f32 %v1526_v23, %v1526_v23  ;;  %1238 = vmatprep.subr.bf16.mxu0 %v1344_v8 }
 0x25a   : > { %v723_v27 = vsel %vm339_vm0, %v719_v26, 0.0 }
 0x25b   : > { %724 = vadd.xlane.f32.xlu1 %v723_v27  ;;  %1239 = vmatpush3.bf16.msra.mxu0 %v1308_v30 }
 0x25c   : > { %1240 = vmatprep.subr.bf16.mxu0 %v1344_v8 }
 0x25f   : > { %1241 = vmatpush3.bf16.msra.mxu0 %v1310_v32 }
 0x260   : > { %1258 = vmatprep.subr.bf16.mxu0 %v1344_v8 }
 0x2e0   : > { %v722_v34 = vpop.xlane.xlu1 %721 }
 0x2e1   : > { %v726_v35 = vmul.f32 0.015625, %v722_v34 }
 0x2e3   : > { %v728_v36 = vadd.f32 1e-05, %v726_v35 }
 0x2e4   : > { %v725_v37 = vpop.xlane.xlu1 %724 }
 0x2e5   : > { %1324 = vrsqrt.f32 %v728_v36  ;;  %v727_v38 = vmul.f32 0.015625, %v725_v37 }
 0x2e7   : > { %v729_v39 = vadd.f32 1e-05, %v727_v38 }
 0x2e9   : > { %1326 = vrsqrt.f32 %v729_v39 }
 0x2f2   : > { %v1325_v40 = vpop.eup %1324 }
 0x2f3   : > { %v732_v41 = vmul.f32 %v1325_v40, %v1521_v19 }
 0x2f5   : > { %v740_v45 = vmul.f32 %v1122_v43, %v732_v41 }
 0x2f6   : > { %v1327_v42 = vpop.eup %1326 }
 0x2f7   : > { %v733_v44 = vmul.f32 %v1327_v42, %v1526_v23 }
 0x2f9   : > { %v741_v46 = vmul.f32 %v1122_v43, %v733_v44 }
 0x2fb   : > { %v774_v47 = vpack.c.bf16 %v741_v46, %v740_v45 }
 0x2fd   : > { %1243 = vmatmul.mubr.msk.bf16.vlgmr.msra.gmra.mxu0 %vm339_vm0, %v774_v47  ;;  %1255 = vmatmul.mubr.msk.bf16.vlgmr.msra.gmra.mxu1 %vm339_vm0, %v774_v47 }
 0x2fe   : > { %1274 = vmatprep.mubr.msk.bf16.mxu0 %vm1345_vm1, %v1344_v8  ;;  %1259 = vmatpush3.bf16.msra.mxu0 %v1312_v48 }
 0x2ff   : > { %1260 = vmatprep.subr.bf16.mxu0 %v1344_v8 }
 0x302   : > { %1261 = vmatpush3.bf16.msra.mxu0 %v1313_v49 }
 0x303   : > { %1262 = vmatprep.subr.bf16.mxu0 %v1344_v8 }
 0x306   : > { %1263 = vmatpush3.bf16.msra.mxu0 %v1314_v50 }
 0x307   : > { %1264 = vmatprep.subr.bf16.mxu0 %v1344_v8 }
 0x30a   : > { %1265 = vmatpush3.bf16.msra.mxu0 %v1315_v51 }
 0x30b   : > { %1266 = vmatprep.subr.bf16.mxu0 %v1344_v8 }
 0x30e   : > { %1267 = vmatpush3.bf16.msra.mxu0 %v1316_v52 }
 0x30f   : > { %1268 = vmatprep.subr.bf16.mxu0 %v1344_v8 }
 0x312   : > { %1269 = vmatpush3.bf16.msra.mxu0 %v1317_v53 }
 0x313   : > { %1270 = vmatprep.subr.bf16.mxu0 %v1344_v8 }
 0x316   : > { %1271 = vmatpush3.bf16.msra.mxu0 %v1318_v54 }
 0x317   : > { %1272 = vmatprep.subr.bf16.mxu0 %v1344_v8 }
 0x31a   : > { %1273 = vmatpush3.bf16.msra.mxu0 %v1319_v55 }
 0x3bd   : > { %v836_v56 = vpop.f32.mrf.mxu0  ;;  %v901_v57 = vpop.f32.mrf.mxu1 }
 0x3be   : > { %v1133_v58 = vmul.f32 -1.442695, %v836_v56 }
 0x3bf   : > { %v1244_v59 = vpop.f32.mrf.mxu0  ;;  %v1256_v60 = vpop.f32.mrf.mxu1 }
 0x3c0   : > { %1328 = vpow2.f32 %v1133_v58 }
 0x3c1   : > { %v839_v61 = vpop.f32.mrf.mxu0  ;;  %v904_v62 = vpop.f32.mrf.mxu1 }
 0x3c2   : > { %v1134_v63 = vmul.f32 -1.442695, %v839_v61 }
 0x3c3   : > { %v1245_v2 = vpop.f32.mrf.mxu0  ;;  %v1257_v3 = vpop.f32.mrf.mxu1 }
 0x3c4   : > { %1330 = vpow2.f32 %v1134_v63 }
 0x3cd   : > { %v1329_v4 = vpop.eup %1328 }
 0x3ce   : > { %v914_v8 = vadd.f32 1.0, %v1329_v4 }
 0x3d0   : > { %1332 = vrcp.f32 %v914_v8 }
 0x3d1   : > { %v1331_v5 = vpop.eup %1330 }
 0x3d2   : > { %v915_v6 = vadd.f32 1.0, %v1331_v5 }
 0x3d4   : > { %1334 = vrcp.f32 %v915_v6 }
 0x3dd   : > { %v1333_v7 = vpop.eup %1332 }
 0x3de   : > { %v920_v9 = vmul.f32 %v1333_v7, %v836_v56 }
 0x3e0   : > { %v922_v12 = vmul.f32 %v920_v9, %v901_v57 }
 0x3e1   : > { %v1335_v10 = vpop.eup %1334 }
 0x3e2   : > { %v921_v11 = vmul.f32 %v1335_v10, %v839_v61 }
 0x3e4   : > { %v923_v13 = vmul.f32 %v921_v11, %v904_v62 }
 0x3e6   : > { %v924_v14 = vpack.c.bf16 %v923_v13, %v922_v12 }
 0x3e8   : > { %1275 = vmatmul.mubr.bf16.vlgmr.msra.gmra.mxu0 %v924_v14 }
 0x4a8   : > { %v1007_v15 = vpop.f32.mrf.mxu0 }
 0x4a9   : > { %v1014_v16 = vadd.f32 %v1007_v15, %v1521_v19 }
 0x4aa   : > { %v1276_v17 = vpop.f32.mrf.mxu0 }
 0x4ab   : > { %1016 = vst.msk [vmem:[%s332_s19] sm:$0xff] %vm339_vm0, %v1014_v16 }
 0x4ac   : > { %v1010_v18 = vpop.f32.mrf.mxu0 }
 0x4ad   : > { %v1015_v20 = vadd.f32 %v1010_v18, %v1526_v23 }
 0x4ae   : > { %v1277_v21 = vpop.f32.mrf.mxu0 }
 0x4af   : > { %1017 = vst.msk [vmem:[%s332_s19 + $0x8] sm:$0xff] %vm339_vm0, %v1015_v20 }
 0x4b0 PF: > { %s19_s30 = sadd.s32 1, %s1342_s30  }
 0x4b1   : > { %p16_p4 = scmp.ge.s32.totalorder %s19_s30, 4  }
 0x4b3   :  { %18 = sbr.rel (!%p16_p4) target bundleno = 1 (0x1), region = 88 }

// kernel: lfm2_forward.4
= control target key start
LH: loop header
LB: loop body
LE: loop exit
PB: predicated region body
PF: predicated region fallthrough
CT: control target
= control target key end

     0   :  { %s3690_s21 = smov 0   ;;  %s4252_s0 = inlined_call_operand.vmem [shape: f32[2,16,64], index: 0, kind: input, shape index: {}]   ;;  %s4253_s1 = inlined_call_operand.vmem [shape: f32[2,1,16], index: 1, kind: input, shape index: {}]   ;;  %s4254_s2 = inlined_call_operand.vmem [shape: f32[2,16,16], index: 2, kind: input, shape index: {}]   ;;  %s4255_s3 = inlined_call_operand.vmem [shape: f32[2,16,16], index: 3, kind: input, shape index: {}]   ;;  %s4256_s4 = inlined_call_operand.vmem [shape: f32[1,64], index: 4, kind: input, shape index: {}]   ;;  %s4257_s5 = inlined_call_operand.vmem [shape: bf16[4,64,16], index: 5, kind: input, shape index: {}]   ;;  %s4258_s6 = inlined_call_operand.vmem [shape: bf16[2,64,16], index: 6, kind: input, shape index: {}]   ;;  %s4259_s7 = inlined_call_operand.vmem [shape: bf16[2,64,16], index: 7, kind: input, shape index: {}]   ;;  %s4260_s8 = inlined_call_operand.vmem [shape: f32[1,16], index: 8, kind: input, shape index: {}]   ;;  %s4261_s9 = inlined_call_operand.vmem [shape: f32[1,16], index: 9, kind: input, shape index: {}]   ;;  %s4262_s10 = inlined_call_operand.vmem [shape: f32[16,16], index: 10, kind: input, shape index: {}]   ;;  %s4263_s11 = inlined_call_operand.vmem [shape: bf16[4,16,64], index: 11, kind: input, shape index: {}]   ;;  %s4264_s12 = inlined_call_operand.vmem [shape: f32[1,64], index: 12, kind: input, shape index: {}]   ;;  %s4265_s13 = inlined_call_operand.vmem [shape: bf16[64,128], index: 13, kind: input, shape index: {}]   ;;  %s4266_s14 = inlined_call_operand.vmem [shape: bf16[64,128], index: 14, kind: input, shape index: {}]   ;;  %s4267_s15 = inlined_call_operand.vmem [shape: bf16[128,64], index: 15, kind: input, shape index: {}]   ;;  %s4268_s16 = inlined_call_operand.vmem [shape: f32[2,16,64], index: 16, kind: output, shape index: {}]  }
   0x1   :  { %4269 = sst [smem:[#allocation2_spill]] %s4252_s0 }
   0x2 LB: > { %s2939_s22 = sadd.s32 4294967295, %s3600_s21   ;;  %p2943_p0 = scmp.ge.s32.totalorder %s3600_s21, 1  ;;  %s3600_s21 = sphi %s3690_s21, %s26_s21  }
   0x3   : > { %p490_p1 = scmp.lt.s32.totalorder %s3600_s21, 3 }
   0x5   : > { %p491_p2 = pnand %p2943_p0, %p490_p1 }
   0x6   : > { %p553_p3 = scmp.lt.s32.totalorder (!%p491_p2), %s2939_s22, 1  ;;  %s4270_s26 = sld [smem:[#allocation2_spill]] (!%p491_p2) }
   0x7   : > { %494 = sbr.rel (%p491_p2) target bundleno = 4802 (0x12c2), region = 84 }
   0xc   : > { %s4272_s22 = smov (!%p553_p3, %s2939_s22), 1  ;;  %vm582_vm0 = vcmask 523264   ;;  %v3468_v6 = vld [vmem:[%s4258_s6 + $0x18] sm:$0xff]   ;;  %v3602_v7 = vmov 0.0   ;;  %v3469_v8 = vld [vmem:[%s4258_s6 + $0x10] sm:$0xff]   ;;  %v3470_v9 = vld [vmem:[%s4258_s6 + $0x8] sm:$0xff]  }
   0xd   : > { %s3701_s23 = sshll.u32 %s4272_s22, 4  ;;  %3203 = vmatprep.subr.bf16.mxu0 %v3602_v7  ;;  %v3471_v10 = vld [vmem:[%s4258_s6] sm:$0xff]   ;;  %vm3603_vm1 = vmmov 0   ;;  %v3472_v24 = vld [vmem:[%s4258_s6 + $0x38] sm:$0xff]   ;;  %v3473_v26 = vld [vmem:[%s4258_s6 + $0x30] sm:$0xff]   ;;  %vm712_vm2 = vcmask 130048  }
   0xe   : > { %s3707_s27 = scalar_lea.vmem %s4270_s26, %s3701_s23  ;;  %3204 = vmatpush3.bf16.msra.mxu0 %v3468_v6  ;;  %3211 = vmatprep.mubr.msk.bf16.mxu0 %vm3603_vm1, %v3602_v7  ;;  %v2952_v20 = vld [vmem:[%s4256_s4] ss:$0 sm:$0xff]  ;;  %v3474_v27 = vld [vmem:[%s4258_s6 + $0x28] sm:$0xff]   ;;  %v3476_v29 = vld [vmem:[%s4257_s5 + $0x18] sm:$0xff]   ;;  %s570_s24 = scalar_lea.vmem %s4255_s3, %s3701_s23 }
   0xf   : > { %v577_v0 = vld [vmem:[%s3707_s27] sm:$0xff]  ;;  %v578_v1 = vld [vmem:[%s3707_s27 + $0x8] sm:$0xff]  ;;  %3205 = vmatprep.subr.bf16.mxu0 %v3602_v7  ;;  %v3477_v30 = vld [vmem:[%s4257_s5 + $0x10] sm:$0xff]   ;;  %s565_s28 = scalar_lea.vmem %s4254_s2, %s3701_s23  ;;  %s575_s25 = scalar_lea.vmem %s4268_s16, %s3701_s23 }
  0x10   : > { %v580_v2 = vmul.f32 %v577_v0, %v577_v0  ;;  %v581_v3 = vmul.f32 %v578_v1, %v578_v1  ;;  %v3475_v28 = vld [vmem:[%s4258_s6 + $0x20] sm:$0xff]   ;;  %v3478_v31 = vld [vmem:[%s4257_s5 + $0x8] sm:$0xff]  }
  0x11   : > { %v3479_v32 = vld [vmem:[%s4257_s5] sm:$0xff]   ;;  %v3801_v53 = vld [vmem:[%s4262_s10 + $0x8] sm:$0xff] }
  0x12   : > { %v583_v4 = vsel %vm582_vm0, %v580_v2, 0.0  ;;  %v586_v5 = vsel %vm582_vm0, %v581_v3, 0.0  ;;  %3206 = vmatpush3.bf16.msra.mxu0 %v3469_v8  ;;  %3215 = vmatprep.subr.mxu1 %v3801_v53  ;;  %v3812_v56 = vld [vmem:[%s4262_s10] sm:$0xff] }
  0x13   : > { %584 = vadd.xlane.f32.xlu0 %v583_v4  ;;  %3207 = vmatprep.subr.bf16.mxu0 %v3602_v7  ;;  %v2958_v4 = vld [vmem:[%s4261_s9] ss:$0 sm:$0xff] }
  0x14   : > { %3216 = vmatpush3.msra.mxu1 %v3801_v53 }
  0x15   : > { %3217 = vmatprep.subr.mxu1 %v3812_v56 }
  0x16   : > { %3208 = vmatpush3.bf16.msra.mxu0 %v3470_v9  ;;  %3218 = vmatpush3.msra.mxu1 %v3812_v56 }
  0x17   : > { %587 = vadd.xlane.f32.xlu0 %v586_v5  ;;  %3209 = vmatprep.subr.bf16.mxu0 %v3602_v7 }
  0x18   : > { %3222 = vmatprep.subr.bf16.mxu1 %v3602_v7 }
  0x1a   : > { %3210 = vmatpush3.bf16.msra.mxu0 %v3471_v10 }
  0x1b   : > { %3234 = vmatprep.subr.bf16.mxu0 %v3602_v7 }
  0x9c   : > { %v585_v11 = vpop.xlane.xlu0 %584 }
  0x9d   : > { %v590_v12 = vmul.f32 0.015625, %v585_v11 }
  0x9f   : > { %v592_v13 = vadd.f32 1e-05, %v590_v12 }
  0xa0   : > { %v588_v14 = vpop.xlane.xlu0 %587 }
  0xa1   : > { %3520 = vrsqrt.f32 %v592_v13  ;;  %v591_v15 = vmul.f32 0.015625, %v588_v14  ;;  %v3480_v13 = vld [vmem:[%s4259_s7 + $0x18] sm:$0xff]  }
  0xa3   : > { %v593_v16 = vadd.f32 1e-05, %v591_v15 }
  0xa5   : > { %3522 = vrsqrt.f32 %v593_v16  ;;  %v3481_v16 = vld [vmem:[%s4259_s7 + $0x10] sm:$0xff]  }
  0xae   : > { %v3521_v17 = vpop.eup %3520 }
  0xaf   : > { %v596_v18 = vmul.f32 %v3521_v17, %v577_v0  ;;  %v3482_v17 = vld [vmem:[%s4259_s7 + $0x8] sm:$0xff]  }
  0xb1   : > { %v604_v22 = vmul.f32 %v2952_v20, %v596_v18 }
  0xb2   : > { %v3523_v19 = vpop.eup %3522 }
  0xb3   : > { %v597_v21 = vmul.f32 %v3523_v19, %v578_v1 }
  0xb5   : > { %v605_v23 = vmul.f32 %v2952_v20, %v597_v21  ;;  %v3483_v20 = vld [vmem:[%s4259_s7] sm:$0xff]  }
  0xb7   : > { %v3738_v25 = vpack.c.bf16 %v605_v23, %v604_v22 }
  0xb9   : > { %3212 = vmatmul.mubr.msk.bf16.vlgmr.msra.gmra.mxu0 %vm582_vm0, %v3738_v25 }
  0xba   : > { %3235 = vmatpush3.bf16.msra.mxu0 %v3472_v24  ;;  %3242 = vmatprep.mubr.msk.bf16.mxu0 %vm3603_vm1, %v3602_v7 }
  0xbb   : > { %3236 = vmatprep.subr.bf16.mxu0 %v3602_v7 }
  0xbe   : > { %3237 = vmatpush3.bf16.msra.mxu0 %v3473_v26 }
  0xbf   : > { %3238 = vmatprep.subr.bf16.mxu0 %v3602_v7 }
  0xc2   : > { %3239 = vmatpush3.bf16.msra.mxu0 %v3474_v27 }
  0xc3   : > { %3240 = vmatprep.subr.bf16.mxu0 %v3602_v7 }
  0xc6   : > { %3241 = vmatpush3.bf16.msra.mxu0 %v3475_v28 }
  0xc7   : > { %3265 = vmatprep.subr.bf16.mxu0 %v3602_v7 }
  0xc9   : > { %3243 = vmatmul.mubr.msk.bf16.vlgmr.msra.gmra.mxu0 %vm582_vm0, %v3738_v25 }
  0xca   : > { %3266 = vmatpush3.bf16.msra.mxu0 %v3476_v29  ;;  %3273 = vmatprep.mubr.msk.bf16.mxu0 %vm3603_vm1, %v3602_v7 }
  0xcb   : > { %3267 = vmatprep.subr.bf16.mxu0 %v3602_v7 }
  0xce   : > { %3268 = vmatpush3.bf16.msra.mxu0 %v3477_v30  ;;  %v3484_v30 = vld [vmem:[%s4259_s7 + $0x38] sm:$0xff]  }
  0xcf   : > { %3269 = vmatprep.subr.bf16.mxu0 %v3602_v7 }
  0xd2   : > { %3270 = vmatpush3.bf16.msra.mxu0 %v3478_v31 }
  0xd3   : > { %3271 = vmatprep.subr.bf16.mxu0 %v3602_v7 }
  0xd6   : > { %3272 = vmatpush3.bf16.msra.mxu0 %v3479_v32 }
  0xd7   : > { %3284 = vmatprep.subr.bf16.mxu0 %v3602_v7 }
  0xd9   : > { %3274 = vmatmul.mubr.msk.bf16.vlgmr.msra.gmra.mxu0 %vm582_vm0, %v3738_v25 }
  0xda   : > { %3286 = vmatprep.mubr.msk.bf16.mxu0 %vm3603_vm1, %v3602_v7 }
 0x179   : > { %v702_v33 = vpop.f32.mrf.mxu0 }
 0x17a   : > { %v710_v34 = vmul.f32 %v702_v33, %v702_v33 }
 0x17b   : > { %v3213_v35 = vpop.f32.mrf.mxu0 }
 0x17c   : > { %v713_v36 = vsel %vm712_vm2, %v710_v34, 0.0  ;;  %v3486_v34 = vld [vmem:[%s4259_s7 + $0x28] sm:$0xff]  }
 0x17d   : > { %714 = vadd.xlane.f32.xlu1 %v713_v36  ;;  %v705_v37 = vpop.f32.mrf.mxu0  ;;  %v3487_v36 = vld [vmem:[%s4259_s7 + $0x20] sm:$0xff]  }
 0x17e   : > { %v711_v38 = vmul.f32 %v705_v37, %v705_v37 }
 0x17f   : > { %v3214_v39 = vpop.f32.mrf.mxu0 }
 0x180   : > { %v716_v40 = vsel %vm712_vm2, %v711_v38, 0.0  ;;  %v3881_v38 = vld [vmem:[%s4260_s8] ss:$0 sm:$0xff] }
 0x181   : > { %717 = vadd.xlane.f32.xlu1 %v716_v40 }
 0x189   : > { %v3783_v41 = vpop.f32.mrf.mxu0 }
 0x18a   : > { %v972_v42 = vmul.f32 %v3783_v41, %v3783_v41 }
 0x18b   : > { %v3244_v43 = vpop.f32.mrf.mxu0 }
 0x18c   : > { %v974_v44 = vsel %vm712_vm2, %v972_v42, 0.0  ;;  %v3905_v43 = vld [vmem:[%s570_s24 + $0x8] sm:$0xff] }
 0x18d   : > { %975 = vadd.xlane.f32.xlu0 %v974_v44  ;;  %v3788_v45 = vpop.f32.mrf.mxu0  ;;  %v3907_v44 = vld [vmem:[%s565_s28] sm:$0xff] }
 0x18e   : > { %v973_v46 = vmul.f32 %v3788_v45, %v3788_v45 }
 0x18f   : > { %v3245_v47 = vpop.f32.mrf.mxu0 }
 0x190   : > { %v977_v48 = vsel %vm712_vm2, %v973_v46, 0.0  ;;  %v3911_v47 = vld [vmem:[%s570_s24] sm:$0xff] }
 0x191   : > { %978 = vadd.xlane.f32.xlu1 %v977_v48 }
 0x199   : > { %v3793_v49 = vpop.f32.mrf.mxu0 }
 0x19a   : > { %v1227_v50 = vmul.f32 %v3793_v49, %v3793_v49 }
 0x19b   : > { %v3275_v51 = vpop.f32.mrf.mxu0 }
 0x19c   : > { %v1229_v52 = vsel %vm712_vm2, %v1227_v50, 0.0 }
 0x19d   : > { %1230 = vadd.xlane.f32.xlu0 %v1229_v52  ;;  %v3803_v54 = vpop.f32.mrf.mxu0 }
 0x19e   : > { %v1228_v55 = vmul.f32 %v3803_v54, %v3803_v54 }
 0x19f   : > { %v3276_v57 = vpop.f32.mrf.mxu0 }
 0x1a0   : > { %v1232_v58 = vsel %vm712_vm2, %v1228_v55, 0.0 }
 0x1a1   : > { %1233 = vadd.xlane.f32.xlu1 %v1232_v58 }
 0x206   : > { %v715_v59 = vpop.xlane.xlu1 %714 }
 0x207   : > { %v720_v60 = vmul.f32 0.0625, %v715_v59 }
 0x209   : > { %v722_v61 = vadd.f32 1e-05, %v720_v60 }
 0x20a   : > { %v718_v62 = vpop.xlane.xlu1 %717 }
 0x20b   : > { %3524 = vrsqrt.f32 %v722_v61  ;;  %v721_v63 = vmul.f32 0.0625, %v718_v62 }
 0x20d   : > { %v723_v0 = vadd.f32 1e-05, %v721_v63 }
 0x20f   : > { %3526 = vrsqrt.f32 %v723_v0 }
 0x216   : > { %v976_v1 = vpop.xlane.xlu0 %975 }
 0x217   : > { %v980_v2 = vmul.f32 0.0625, %v976_v1 }
 0x218   : > { %v3525_v3 = vpop.eup %3524 }
 0x219   : > { %v982_v5 = vadd.f32 1e-05, %v980_v2  ;;  %v726_v6 = vmul.f32 %v3525_v3, %v702_v33  ;;  %v3485_v33 = vld [vmem:[%s4259_s7 + $0x30] sm:$0xff]  }
 0x21a   : > { %v979_v8 = vpop.xlane.xlu1 %978 }
 0x21b   : > { %v981_v9 = vmul.f32 0.0625, %v979_v8  ;;  %v3821_v10 = vmul.f32 %v2958_v4, %v726_v6  ;;  %3528 = vrsqrt.f32 %v982_v5 }
 0x21c   : > { %v3527_v11 = vpop.eup %3526 }
 0x21d   : > { %3219 = vmatprep.mubr.msk.f32.mxu1 %vm712_vm2, %v3821_v10  ;;  %v727_v12 = vmul.f32 %v3527_v11, %v705_v37  ;;  %v983_v14 = vadd.f32 1e-05, %v981_v9  ;;  %v736_v50 = vmul.f32 %v3821_v10, %v3907_v44 }
 0x21f   : > { %v3828_v15 = vmul.f32 %v2958_v4, %v727_v12  ;;  %3530 = vrsqrt.f32 %v983_v14 }
 0x221   : > { %3220 = vmatmul.mubr.msk.f32.vlgmr.msra.gmra.mxu1 %vm712_vm2, %v3828_v15 }
 0x222   : > { %3223 = vmatpush3.bf16.msra.mxu1 %v3480_v13  ;;  %3230 = vmatprep.mubr.msk.bf16.mxu1 %vm3603_vm1, %v3602_v7 }
 0x223   : > { %3224 = vmatprep.subr.bf16.mxu1 %v3602_v7 }
 0x226   : > { %3225 = vmatpush3.bf16.msra.mxu1 %v3481_v16  ;;  %v1231_v19 = vpop.xlane.xlu0 %1230 }
 0x227   : > { %3226 = vmatprep.subr.bf16.mxu1 %v3602_v7  ;;  %v1235_v21 = vmul.f32 0.0625, %v1231_v19 }
 0x228   : > { %v3529_v18 = vpop.eup %3528 }
 0x229   : > { %v986_v22 = vmul.f32 %v3529_v18, %v3783_v41  ;;  %v1237_v24 = vadd.f32 1e-05, %v1235_v21 }
 0x22a   : > { %3227 = vmatpush3.bf16.msra.mxu1 %v3482_v17  ;;  %v1234_v26 = vpop.xlane.xlu1 %1233 }
 0x22b   : > { %3228 = vmatprep.subr.bf16.mxu1 %v3602_v7  ;;  %v3848_v27 = vmul.f32 %v2958_v4, %v986_v22  ;;  %v1236_v29 = vmul.f32 0.0625, %v1234_v26  ;;  %3532 = vrsqrt.f32 %v1237_v24  ;;  %v3489_v26 = vld [vmem:[%s4257_s5 + $0x30] sm:$0xff]  }
 0x22c   : > { %v3531_v23 = vpop.eup %3530 }
 0x22d   : > { %v987_v28 = vmul.f32 %v3531_v23, %v3788_v45  ;;  %v1238_v32 = vadd.f32 1e-05, %v1236_v29  ;;  %v3909_v45 = vld [vmem:[%s565_s28 + $0x8] sm:$0xff]  ;;  %v990_v5 = vmul.f32 %v3848_v27, %v3907_v44  ;;  %v3488_v23 = vld [vmem:[%s4257_s5 + $0x38] sm:$0xff]   ;;  %s560_s28 = scalar_lea.vmem %s4253_s1, %s4272_s22  ;;  %v613_v29 = vlaneseq }
 0x22e   : > { %3229 = vmatpush3.bf16.msra.mxu1 %v3483_v20  ;;  %v737_v51 = vmul.f32 %v3828_v15, %v3909_v45 }
 0x22f   : > { %3246 = vmatprep.subr.mxu1 %v3801_v53  ;;  %v989_v31 = vmul.f32 %v2958_v4, %v987_v28  ;;  %3534 = vrsqrt.f32 %v1238_v32  ;;  %v3491_v28 = vld [vmem:[%s4257_s5 + $0x20] sm:$0xff]   ;;  %v617_v32 = vand.u32 127, %v613_v29 }
 0x231   : > { %3231 = vmatmul.mubr.msk.bf16.vlgmr.msra.gmra.mxu1 %vm582_vm0, %v3738_v25  ;;  %v991_v1 = vmul.f32 %v989_v31, %v3909_v45 }
 0x232   : > { %3247 = vmatpush3.msra.mxu1 %v3801_v53  ;;  %3250 = vmatprep.mubr.msk.f32.mxu1 %vm712_vm2, %v3848_v27  ;;  %v3490_v27 = vld [vmem:[%s4257_s5 + $0x28] sm:$0xff]  }
 0x233   : > { %3248 = vmatprep.subr.mxu1 %v3812_v56 }
 0x234   : > { %3249 = vmatpush3.msra.mxu1 %v3812_v56 }
 0x235   : > { %3253 = vmatprep.subr.bf16.mxu1 %v3602_v7 }
 0x238   : > { %v3533_v35 = vpop.eup %3532 }
 0x239   : > { %3251 = vmatmul.mubr.msk.f32.vlgmr.msra.gmra.mxu1 %vm712_vm2, %v989_v31  ;;  %v1241_v37 = vmul.f32 %v3533_v35, %v3793_v49  ;;  %v614_v31 = vshrl.u32 %v613_v29, 7 }
 0x23a   : > { %3254 = vmatpush3.bf16.msra.mxu1 %v3484_v30  ;;  %3261 = vmatprep.mubr.msk.bf16.mxu1 %vm3603_vm1, %v3602_v7  ;;  %v622_v30 = vld [vmem:[%s560_s28] sm:$0x1] }
 0x23b   : > { %3255 = vmatprep.subr.bf16.mxu1 %v3602_v7  ;;  %v1249_v40 = vmul.f32 %v3881_v38, %v1241_v37  ;;  %vm623_vm3 = vcmp.gt.f32.partialorder %v622_v30, 0.0  ;;  %vm618_vm4 = vcmp.le.s32.totalorder %v617_v32, %v614_v31 }
 0x23c   : > { %v3535_v39 = vpop.eup %3534 }
 0x23d   : > { %v1242_v41 = vmul.f32 %v3535_v39, %v3803_v54  ;;  %v1251_v19 = vmul.f32 %v1249_v40, %v3907_v44 }
 0x23e   : > { %3256 = vmatpush3.bf16.msra.mxu1 %v3485_v33  ;;  %v628_v33 = vsub.s32 0, %v614_v31 }
 0x23f   : > { %3257 = vmatprep.subr.bf16.mxu1 %v3602_v7  ;;  %v1250_v42 = vmul.f32 %v3881_v38, %v1242_v41 }
 0x241   : > { %v1252_v18 = vmul.f32 %v1250_v42, %v3909_v45 }
 0x242   : > { %3258 = vmatpush3.bf16.msra.mxu1 %v3486_v34  ;;  %v3604_v34 = vmov -1e+30  }
 0x243   : > { %3259 = vmatprep.subr.bf16.mxu1 %v3602_v7  ;;  %v624_v35 = vsel %vm623_vm3, 0.0, %v3604_v34  ;;  %v620_v39 = vsel %vm618_vm4, 0.0, %v3604_v34 }
 0x244   : > { %v629_v37 = vrot.slane %v624_v35, %v628_v33 }
 0x246   : > { %3260 = vmatpush3.bf16.msra.mxu1 %v3487_v36  ;;  %v615_v36 = vadd.s32 8, %v614_v31 }
 0x247   : > { %3277 = vmatprep.subr.mxu1 %v3801_v53 }
 0x248   : > { %vm619_vm5 = vcmp.le.s32.totalorder %v617_v32, %v615_v36 }
 0x249   : > { %3262 = vmatmul.mubr.msk.bf16.vlgmr.msra.gmra.mxu1 %vm582_vm0, %v3738_v25  ;;  %v621_v41 = vsel %vm619_vm5, 0.0, %v3604_v34 }
 0x24a   : > { %3278 = vmatpush3.msra.mxu1 %v3801_v53  ;;  %3281 = vmatprep.mubr.msk.f32.mxu1 %vm712_vm2, %v1249_v40  ;;  %v3970_v40 = vadd.f32 %v629_v37, %v620_v39 }
 0x24b   : > { %3279 = vmatprep.subr.mxu1 %v3812_v56 }
 0x24c   : > { %3280 = vmatpush3.msra.mxu1 %v3812_v56 }
 0x24d   : > { %3290 = vmatprep.subr.bf16.mxu1 %v3602_v7 }
 0x251   : > { %3282 = vmatmul.mubr.msk.f32.vlgmr.msra.gmra.mxu1 %vm712_vm2, %v1250_v42 }
 0x252   : > { %3292 = vmatprep.mubr.msk.bf16.mxu1 %vm3603_vm1, %v3602_v7 }
 0x2e1   : > { %v3221_v46 = vpop.f32.mrf.mxu1 }
 0x2e2   : > { %v820_v48 = vmul.f32 %v3221_v46, %v3905_v43 }
 0x2e3   : > { %v810_v49 = vpop.f32.mrf.mxu1 }
 0x2e4   : > { %v819_v52 = vmul.f32 %v810_v49, %v3911_v47  ;;  %v822_v54 = vadd.f32 %v820_v48, %v737_v51  ;;  %v3973_v48 = vadd.f32 %v629_v37, %v621_v41 }
 0x2e6   : > { %v821_v55 = vadd.f32 %v819_v52, %v736_v50 }
 0x2e8   : > { %v896_v57 = vpack.c.bf16 %v822_v54, %v821_v55 }
 0x2ea   : > { %v1343_v58 = vsel %vm712_vm2, %v896_v57, 0 }
 0x2eb   : > { %3285 = vmatpush3.bf16.xpose.msra.mxu0 %v1343_v58 }
 0x2ec   : > { %3296 = vmatprep.subr.bf16.mxu0 %v3602_v7 }
 0x2f1   : > { %v889_v59 = vpop.f32.mrf.mxu1 }
 0x2f3   : > { %v3232_v60 = vpop.f32.mrf.mxu1 }
 0x2f5   : > { %v892_v61 = vpop.f32.mrf.mxu1 }
 0x2f6   : > { %v3921_v62 = vpack.c.bf16 %v892_v61, %v889_v59 }
 0x2f7   : > { %v3233_v63 = vpop.f32.mrf.mxu1 }
 0x2f8   : > { %3291 = vmatpush3.bf16.msra.mxu1 %v3921_v62 }
 0x2f9   : > { %v3252_v0 = vpop.f32.mrf.mxu1  ;;  %3308 = vmatprep.subr.mxu1 %v3801_v53 }
 0x2fa   : > { %v1074_v2 = vmul.f32 %v3252_v0, %v3905_v43 }
 0x2fb   : > { %v1064_v3 = vpop.f32.mrf.mxu1 }
 0x2fc   : > { %v3927_v4 = vadd.f32 %v1074_v2, %v991_v1  ;;  %v1073_v6 = vmul.f32 %v1064_v3, %v3911_v47 }
 0x2fe   : > { %v3932_v8 = vadd.f32 %v1073_v6, %v990_v5 }
 0x300   : > { %v1151_v9 = vpack.c.bf16 %v3927_v4, %v3932_v8 }
 0x309   : > { %v1144_v10 = vpop.f32.mrf.mxu1 }
 0x30b   : > { %v3263_v11 = vpop.f32.mrf.mxu1 }
 0x30d   : > { %v1147_v12 = vpop.f32.mrf.mxu1 }
 0x30e   : > { %v3936_v13 = vpack.c.bf16 %v1147_v12, %v1144_v10 }
 0x30f   : > { %v3264_v14 = vpop.f32.mrf.mxu1 }
 0x311   : > { %v3283_v15 = vpop.f32.mrf.mxu1 }
 0x312   : > { %v1335_v16 = vmul.f32 %v3283_v15, %v3905_v43 }
 0x313   : > { %v1325_v17 = vpop.f32.mrf.mxu1 }
 0x314   : > { %v1334_v20 = vmul.f32 %v1325_v17, %v3911_v47  ;;  %v1337_v21 = vadd.f32 %v1335_v16, %v1252_v18 }
 0x316   : > { %v1336_v22 = vadd.f32 %v1334_v20, %v1251_v19 }
 0x318   : > { %v1338_v24 = vpack.c.bf16 %v1337_v21, %v1336_v22 }
 0x31a   : > { %3287 = vmatmul.mubr.msk.bf16.vlgmr.msra.gmra.mxu0 %vm712_vm2, %v1338_v24 }
 0x31b   : > { %3297 = vmatpush3.bf16.msra.mxu0 %v3488_v23  ;;  %3304 = vmatprep.mubr.msk.bf16.mxu0 %vm3603_vm1, %v3602_v7 }
 0x31c   : > { %3298 = vmatprep.subr.bf16.mxu0 %v3602_v7 }
 0x31f   : > { %3299 = vmatpush3.bf16.msra.mxu0 %v3489_v26 }
 0x320   : > { %3300 = vmatprep.subr.bf16.mxu0 %v3602_v7 }
 0x323   : > { %3301 = vmatpush3.bf16.msra.mxu0 %v3490_v27 }
 0x324   : > { %3302 = vmatprep.subr.bf16.mxu0 %v3602_v7 }
 0x327   : > { %3303 = vmatpush3.bf16.msra.mxu0 %v3491_v28 }
 0x328   : > { %3315 = vmatprep.subr.bf16.mxu0 %v3602_v7 }
 0x32a   : > { %3305 = vmatmul.mubr.msk.bf16.vlgmr.msra.gmra.mxu0 %vm582_vm0, %v3738_v25 }
 0x32b   : > { %3316 = vmatpush3.bf16.xpose.msra.mxu0 %v1343_v58  ;;  %3317 = vmatprep.mubr.msk.bf16.mxu0 %vm3603_vm1, %v3602_v7 }
 0x32c   : > { %3321 = vmatprep.subr.bf16.mxu0 %v3602_v7 }
 0x3da   : > { %v1379_v42 = vpop.f32.mrf.mxu0 }
 0x3db   : > { %v1380_v46 = vadd.f32 %v1379_v42, %v3970_v40 }
 0x3dc   : > { %v3288_v49 = vpop.f32.mrf.mxu0 }
 0x3dd   : > { %v1386_v50 = vsel %vm712_vm2, %v1380_v46, -inf }
 0x3de   : > { %1387 = vmax.xlane.f32.xlu0 %v1386_v50  ;;  %v1382_v51 = vpop.f32.mrf.mxu0 }
 0x3df   : > { %v1383_v52 = vadd.f32 %v1382_v51, %v3973_v48 }
 0x3e0   : > { %v3289_v54 = vpop.f32.mrf.mxu0 }
 0x3e1   : > { %v1389_v55 = vsel %vm712_vm2, %v1383_v52, -inf }
 0x3e2   : > { %1390 = vmax.xlane.f32.xlu1 %v1389_v55 }
 0x3ea   : > { %v1523_v57 = vpop.f32.mrf.mxu0 }
 0x3eb   : > { %v1530_v58 = vmul.f32 %v1523_v57, %v1523_v57 }
 0x3ec   : > { %v3306_v59 = vpop.f32.mrf.mxu0 }
 0x3ed   : > { %v1532_v60 = vsel %vm712_vm2, %v1530_v58, 0.0 }
 0x3ee   : > { %1533 = vadd.xlane.f32.xlu0 %v1532_v60  ;;  %v1526_v61 = vpop.f32.mrf.mxu0 }
 0x3ef   : > { %v1531_v63 = vmul.f32 %v1526_v61, %v1526_v61 }
 0x3f0   : > { %v3307_v0 = vpop.f32.mrf.mxu0 }
 0x3f1   : > { %v1535_v1 = vsel %vm712_vm2, %v1531_v63, 0.0 }
 0x3f2   : > { %1536 = vadd.xlane.f32.xlu1 %v1535_v1 }
 0x467   : > { %v1388_v2 = vpop.xlane.xlu0 %1387 }
 0x468   : > { %v1392_v3 = vsub.f32 %v1380_v46, %v1388_v2 }
 0x46a   : > { %v1394_v5 = vmul.f32 1.442695, %v1392_v3 }
 0x46b   : > { %v1391_v6 = vpop.xlane.xlu1 %1390 }
 0x46c   : > { %v1393_v10 = vsub.f32 %v1383_v52, %v1391_v6  ;;  %3536 = vpow2.f32 %v1394_v5 }
 0x46e   : > { %v1396_v11 = vmul.f32 1.442695, %v1393_v10 }
 0x470   : > { %3538 = vpow2.f32 %v1396_v11 }
 0x477   : > { %v1534_v12 = vpop.xlane.xlu0 %1533 }
 0x478   : > { %v1538_v14 = vmul.f32 0.0625, %v1534_v12  ;;  %v3492_v12 = vld [vmem:[%s4263_s11] sm:$0xff]  }
 0x479   : > { %v3537_v17 = vpop.eup %3536 }
 0x47a   : > { %v1540_v15 = vadd.f32 1e-05, %v1538_v14  ;;  %v1398_v5 = vsel %vm712_vm2, %v3537_v17, 0.0  ;;  %v3493_v14 = vld [vmem:[%s4263_s11 + $0x8] sm:$0xff]  }
 0x47b   : > { %v1537_v16 = vpop.xlane.xlu1 %1536 }
 0x47c   : > { %3540 = vrsqrt.f32 %v1540_v15  ;;  %v1539_v18 = vmul.f32 0.0625, %v1537_v16 }
 0x47d   : > { %v3980_v19 = vpop.eup %3538 }
 0x47e   : > { %v1541_v20 = vadd.f32 1e-05, %v1539_v18  ;;  %v1404_v21 = vpack.c.bf16 %v3980_v19, %v3537_v17  ;;  %v1401_v11 = vsel %vm712_vm2, %v3980_v19, 0.0 }
 0x480   : > { %3542 = vrsqrt.f32 %v1541_v20  ;;  %3293 = vmatmul.mubr.msk.bf16.vlgmr.msra.gmra.mxu1 %vm712_vm2, %v1404_v21 }
 0x481   : > { %3309 = vmatpush3.msra.mxu1 %v3801_v53 }
 0x482   : > { %3310 = vmatprep.subr.mxu1 %v3812_v56 }
 0x483   : > { %3311 = vmatpush3.msra.mxu1 %v3812_v56 }
 0x484   : > { %3327 = vmatprep.subr.bf16.mxu1 %v3602_v7 }
 0x489   : > { %v3541_v22 = vpop.eup %3540 }
 0x48a   : > { %v1544_v23 = vmul.f32 %v3541_v22, %v1523_v57 }
 0x48c   : > { %v1546_v24 = vmul.f32 %v3881_v38, %v1544_v23 }
 0x48d   : > { %v3543_v26 = vpop.eup %3542 }
 0x48e   : > { %3312 = vmatprep.mubr.msk.f32.mxu1 %vm712_vm2, %v1546_v24  ;;  %v1545_v27 = vmul.f32 %v3543_v26, %v1526_v61  ;;  %v1548_v37 = vmul.f32 %v1546_v24, %v3907_v44 }
 0x490   : > { %v1547_v28 = vmul.f32 %v3881_v38, %v1545_v27 }
 0x492   : > { %3313 = vmatmul.mubr.msk.f32.vlgmr.msra.gmra.mxu1 %vm712_vm2, %v1547_v28  ;;  %v1549_v36 = vmul.f32 %v1547_v28, %v3909_v45 }
 0x493   : > { %3329 = vmatprep.mubr.msk.bf16.mxu1 %vm3603_vm1, %v3602_v7  ;;  %3328 = vmatpush3.bf16.msra.mxu1 %v3493_v14 }
 0x494   : > { %3339 = vmatprep.subr.bf16.mxu1 %v3602_v7 }
 0x540   : > { %v1442_v29 = vpop.f32.mrf.mxu1 }
 0x542   : > { %v3294_v30 = vpop.f32.mrf.mxu1 }
 0x544   : > { %v1445_v31 = vpop.f32.mrf.mxu1 }
 0x546   : > { %v3295_v32 = vpop.f32.mrf.mxu1 }
 0x552   : > { %v3314_v33 = vpop.f32.mrf.mxu1 }
 0x553   : > { %v1632_v34 = vmul.f32 %v3314_v33, %v3905_v43  ;;  %v3494_v33 = vld [vmem:[%s4257_s5 + $0x58] sm:$0xff]  }
 0x554   : > { %v1622_v35 = vpop.f32.mrf.mxu1 }
 0x555   : > { %v1631_v39 = vmul.f32 %v1622_v35, %v3911_v47  ;;  %v1634_v41 = vadd.f32 %v1632_v34, %v1549_v36  ;;  %v3495_v35 = vld [vmem:[%s4257_s5 + $0x50] sm:$0xff]   ;;  %v3496_v36 = vld [vmem:[%s4257_s5 + $0x48] sm:$0xff]  }
 0x557   : > { %v1633_v42 = vadd.f32 %v1631_v39, %v1548_v37  ;;  %v3497_v37 = vld [vmem:[%s4257_s5 + $0x40] sm:$0xff]  }
 0x559   : > { %v1635_v46 = vpack.c.bf16 %v1634_v41, %v1633_v42 }
 0x55b   : > { %3318 = vmatmul.mubr.msk.bf16.vlgmr.msra.gmra.mxu0 %vm712_vm2, %v1635_v46 }
 0x55c   : > { %3322 = vmatpush3.bf16.msra.mxu0 %v3921_v62  ;;  %3323 = vmatprep.mubr.msk.bf16.mxu0 %vm3603_vm1, %v3602_v7 }
 0x55d   : > { %3333 = vmatprep.subr.bf16.mxu0 %v3602_v7 }
 0x61b   : > { %v1673_v49 = vpop.f32.mrf.mxu0 }
 0x61c   : > { %v1674_v50 = vadd.f32 %v1673_v49, %v3970_v40 }
 0x61d   : > { %v3319_v51 = vpop.f32.mrf.mxu0 }
 0x61e   : > { %v1680_v52 = vsel %vm712_vm2, %v1674_v50, -inf }
 0x61f   : > { %1681 = vmax.xlane.f32.xlu0 %v1680_v52  ;;  %v1676_v54 = vpop.f32.mrf.mxu0 }
 0x620   : > { %v1677_v55 = vadd.f32 %v1676_v54, %v3973_v48 }
 0x621   : > { %v3320_v57 = vpop.f32.mrf.mxu0 }
 0x622   : > { %v1683_v58 = vsel %vm712_vm2, %v1677_v55, -inf }
 0x623   : > { %1684 = vmax.xlane.f32.xlu1 %v1683_v58 }
 0x6a8   : > { %v1682_v62 = vpop.xlane.xlu0 %1681 }
 0x6a9   : > { %v1686_v59 = vsub.f32 %v1674_v50, %v1682_v62 }
 0x6ab   : > { %v1688_v60 = vmul.f32 1.442695, %v1686_v59 }
 0x6ac   : > { %v1685_v61 = vpop.xlane.xlu1 %1684 }
 0x6ad   : > { %3544 = vpow2.f32 %v1688_v60  ;;  %v1687_v63 = vsub.f32 %v1677_v55, %v1685_v61 }
 0x6af   : > { %v1690_v0 = vmul.f32 1.442695, %v1687_v63 }
 0x6b1   : > { %3546 = vpow2.f32 %v1690_v0 }
 0x6ba   : > { %v3545_v1 = vpop.eup %3544 }
 0x6bb   : > { %v1692_v2 = vsel %vm712_vm2, %v3545_v1, 0.0 }
 0x6bc   : > { %1693 = vadd.xlane.f32.xlu0 %v1692_v2 }
 0x6be   : > { %v3547_v3 = vpop.eup %3546 }
 0x6bf   : > { %v1695_v6 = vsel %vm712_vm2, %v3547_v3, 0.0  ;;  %v1698_v10 = vpack.c.bf16 %v3547_v3, %v3545_v1 }
 0x6c0   : > { %1399 = vadd.xlane.f32.xlu0 %v1398_v5  ;;  %1696 = vadd.xlane.f32.xlu1 %v1695_v6 }
 0x6c1   : > { %3324 = vmatmul.mubr.msk.bf16.vlgmr.msra.gmra.mxu0 %vm712_vm2, %v1698_v10 }
 0x6c2   : > { %3335 = vmatprep.mubr.msk.bf16.mxu0 %vm3603_vm1, %v3602_v7  ;;  %3334 = vmatpush3.bf16.msra.mxu0 %v3492_v12 }
 0x6c3   : > { %3351 = vmatprep.subr.mxu0 %v3801_v53 }
 0x6c4   : > { %1402 = vadd.xlane.f32.xlu1 %v1401_v11 }
 0x745   : > { %v1694_v15 = vpop.xlane.xlu0 %1693 }
 0x749   : > { %v1400_v16 = vpop.xlane.xlu0 %1399  ;;  %v1697_v17 = vpop.xlane.xlu1 %1696 }
 0x74a   : > { %3548 = vrcp.f32 %v1400_v16 }
 0x74d   : > { %v1403_v18 = vpop.xlane.xlu1 %1402 }
 0x74e   : > { %3550 = vrcp.f32 %v1403_v18  ;;  %v4067_v18 = vsel %vm712_vm2, %v1151_v9, 0 }
 0x74f   : > { %3552 = vrcp.f32 %v1694_v15 }
 0x750   : > { %3554 = vrcp.f32 %v1697_v17 }
 0x757   : > { %v3549_v19 = vpop.eup %3548 }
 0x758   : > { %v1451_v21 = vmul.f32 %v3549_v19, %v1442_v29 }
 0x75b   : > { %v3551_v20 = vpop.eup %3550 }
 0x75c   : > { %v1452_v22 = vmul.f32 %v3551_v20, %v1445_v31  ;;  %v3553_v27 = vpop.eup %3552 }
 0x75d   : > { %v3555_v28 = vpop.eup %3554 }
 0x75e   : > { %v1453_v23 = vpack.c.bf16 %v1452_v22, %v1451_v21 }
 0x760   : > { %3336 = vmatmul.mubr.msk.bf16.vlgmr.msra.gmra.mxu0 %vm712_vm2, %v1453_v23 }
 0x761   : > { %3352 = vmatpush3.msra.mxu0 %v3801_v53 }
 0x762   : > { %3353 = vmatprep.subr.mxu0 %v3812_v56 }
 0x763   : > { %3354 = vmatpush3.msra.mxu0 %v3812_v56 }
 0x764   : > { %3358 = vmatprep.subr.bf16.mxu0 %v3602_v7 }
 0x781   : > { %v1736_v24 = vpop.f32.mrf.mxu0 }
 0x782   : > { %v1745_v29 = vmul.f32 %v3553_v27, %v1736_v24 }
 0x783   : > { %v3325_v26 = vpop.f32.mrf.mxu0 }
 0x785   : > { %v1739_v30 = vpop.f32.mrf.mxu0 }
 0x786   : > { %v1746_v31 = vmul.f32 %v3555_v28, %v1739_v30 }
 0x787   : > { %v3326_v32 = vpop.f32.mrf.mxu0 }
 0x788   : > { %v1747_v34 = vpack.c.bf16 %v1746_v31, %v1745_v29 }
 0x78a   : > { %3330 = vmatmul.mubr.msk.bf16.vlgmr.msra.gmra.mxu1 %vm712_vm2, %v1747_v34 }
 0x78b   : > { %3340 = vmatpush3.bf16.msra.mxu1 %v3494_v33  ;;  %3347 = vmatprep.mubr.msk.bf16.mxu1 %vm3603_vm1, %v3602_v7 }
 0x78c   : > { %3341 = vmatprep.subr.bf16.mxu1 %v3602_v7 }
 0x78f   : > { %3342 = vmatpush3.bf16.msra.mxu1 %v3495_v35 }
 0x790   : > { %3343 = vmatprep.subr.bf16.mxu1 %v3602_v7 }
 0x793   : > { %3344 = vmatpush3.bf16.msra.mxu1 %v3496_v36 }
 0x794   : > { %3345 = vmatprep.subr.bf16.mxu1 %v3602_v7 }
 0x797   : > { %3346 = vmatpush3.bf16.msra.mxu1 %v3497_v37 }
 0x798   : > { %3364 = vmatprep.subr.bf16.mxu1 %v3602_v7 }
 0x79a   : > { %3348 = vmatmul.mubr.msk.bf16.vlgmr.msra.gmra.mxu1 %vm582_vm0, %v3738_v25 }
 0x79b   : > { %3365 = vmatpush3.bf16.msra.mxu1 %v3936_v13  ;;  %3366 = vmatprep.mubr.msk.bf16.mxu1 %vm3603_vm1, %v3602_v7 }
 0x79c   : > { %3376 = vmatprep.subr.bf16.mxu1 %v3602_v7 }
 0x820   : > { %v1844_v39 = vpop.f32.mrf.mxu0 }
 0x822   : > { %v3337_v41 = vpop.f32.mrf.mxu0 }
 0x824   : > { %v1847_v42 = vpop.f32.mrf.mxu0 }
 0x826   : > { %v3338_v46 = vpop.f32.mrf.mxu0 }
 0x84a   : > { %v1794_v49 = vpop.f32.mrf.mxu1 }
 0x84b   : > { %v4053_v50 = vadd.f32 %v1844_v39, %v1794_v49 }
 0x84c   : > { %v3331_v51 = vpop.f32.mrf.mxu1 }
 0x84d   : > { %v3498_v51 = vld [vmem:[%s4257_s5 + $0x78] sm:$0xff]  }
 0x84e   : > { %v1797_v52 = vpop.f32.mrf.mxu1 }
 0x84f   : > { %v4055_v54 = vadd.f32 %v1847_v42, %v1797_v52 }
 0x850   : > { %v3332_v55 = vpop.f32.mrf.mxu1 }
 0x85a   : > { %v1918_v57 = vpop.f32.mrf.mxu1 }
 0x85b   : > { %v1925_v58 = vmul.f32 %v1918_v57, %v1918_v57 }
 0x85c   : > { %v3349_v62 = vpop.f32.mrf.mxu1 }
 0x85d   : > { %v1927_v59 = vsel %vm712_vm2, %v1925_v58, 0.0  ;;  %v3500_v58 = vld [vmem:[%s4257_s5 + $0x68] sm:$0xff]   ;;  %v3501_v62 = vld [vmem:[%s4257_s5 + $0x60] sm:$0xff]  }
 0x85e   : > { %1928 = vadd.xlane.f32.xlu0 %v1927_v59  ;;  %v1921_v60 = vpop.f32.mrf.mxu1  ;;  %v3502_v59 = vld [vmem:[%s4263_s11 + $0x10] sm:$0xff]  }
 0x85f   : > { %v1926_v61 = vmul.f32 %v1921_v60, %v1921_v60 }
 0x860   : > { %v3350_v63 = vpop.f32.mrf.mxu1 }
 0x861   : > { %v1930_v0 = vsel %vm712_vm2, %v1926_v61, 0.0 }
 0x862   : > { %1931 = vadd.xlane.f32.xlu1 %v1930_v0 }
 0x8e7   : > { %v1929_v1 = vpop.xlane.xlu0 %1928 }
 0x8e8   : > { %v1933_v2 = vmul.f32 0.0625, %v1929_v1 }
 0x8ea   : > { %v1935_v3 = vadd.f32 1e-05, %v1933_v2 }
 0x8eb   : > { %v1932_v5 = vpop.xlane.xlu1 %1931 }
 0x8ec   : > { %3556 = vrsqrt.f32 %v1935_v3  ;;  %v1934_v6 = vmul.f32 0.0625, %v1932_v5 }
 0x8ee   : > { %v1936_v10 = vadd.f32 1e-05, %v1934_v6 }
 0x8f0   : > { %3558 = vrsqrt.f32 %v1936_v10 }
 0x8f9   : > { %v3557_v11 = vpop.eup %3556 }
 0x8fa   : > { %v1939_v12 = vmul.f32 %v3557_v11, %v1918_v57  ;;  %v3499_v57 = vld [vmem:[%s4257_s5 + $0x70] sm:$0xff]  }
 0x8fc   : > { %v1941_v14 = vmul.f32 %v3881_v38, %v1939_v12 }
 0x8fd   : > { %v3559_v15 = vpop.eup %3558 }
 0x8fe   : > { %3355 = vmatprep.mubr.msk.f32.mxu0 %vm712_vm2, %v1941_v14  ;;  %v1940_v16 = vmul.f32 %v3559_v15, %v1921_v60  ;;  %v1943_v23 = vmul.f32 %v1941_v14, %v3907_v44 }
 0x900   : > { %v1942_v17 = vmul.f32 %v3881_v38, %v1940_v16 }
 0x902   : > { %3356 = vmatmul.mubr.msk.f32.vlgmr.msra.gmra.mxu0 %vm712_vm2, %v1942_v17  ;;  %v1944_v22 = vmul.f32 %v1942_v17, %v3909_v45 }
 0x903   : > { %3359 = vmatpush3.bf16.xpose.msra.mxu0 %v4067_v18  ;;  %3360 = vmatprep.mubr.msk.bf16.mxu0 %vm3603_vm1, %v3602_v7 }
 0x904   : > { %3370 = vmatprep.subr.bf16.mxu0 %v3602_v7 }
 0x9c2   : > { %v3357_v19 = vpop.f32.mrf.mxu0 }
 0x9c3   : > { %v2027_v20 = vmul.f32 %v3357_v19, %v3905_v43 }
 0x9c4   : > { %v2017_v21 = vpop.f32.mrf.mxu0 }
 0x9c5   : > { %v2026_v4 = vmul.f32 %v2017_v21, %v3911_v47  ;;  %v2029_v8 = vadd.f32 %v2027_v20, %v1944_v22 }
 0x9c7   : > { %v2028_v9 = vadd.f32 %v2026_v4, %v1943_v23 }
 0x9c9   : > { %v2030_v24 = vpack.c.bf16 %v2029_v8, %v2028_v9 }
 0x9cb   : > { %3361 = vmatmul.mubr.msk.bf16.vlgmr.msra.gmra.mxu0 %vm712_vm2, %v2030_v24 }
 0x9cc   : > { %3372 = vmatprep.mubr.msk.bf16.mxu0 %vm3603_vm1, %v3602_v7  ;;  %3371 = vmatpush3.bf16.msra.mxu0 %v3502_v59 }
 0x9cd   : > { %3388 = vmatprep.subr.mxu0 %v3801_v53 }
 0xa8b   : > { %v2071_v26 = vpop.f32.mrf.mxu0 }
 0xa8c   : > { %v2072_v27 = vadd.f32 %v2071_v26, %v3970_v40 }
 0xa8d   : > { %v3362_v28 = vpop.f32.mrf.mxu0 }
 0xa8e   : > { %v2078_v30 = vsel %vm712_vm2, %v2072_v27, -inf }
 0xa8f   : > { %2079 = vmax.xlane.f32.xlu0 %v2078_v30  ;;  %v2074_v29 = vpop.f32.mrf.mxu0 }
 0xa90   : > { %v2075_v31 = vadd.f32 %v2074_v29, %v3973_v48 }
 0xa91   : > { %v3363_v32 = vpop.f32.mrf.mxu0 }
 0xa92   : > { %v2081_v33 = vsel %vm712_vm2, %v2075_v31, -inf }
 0xa93   : > { %2082 = vmax.xlane.f32.xlu1 %v2081_v33 }
 0xb18   : > { %v2080_v34 = vpop.xlane.xlu0 %2079 }
 0xb19   : > { %v2084_v35 = vsub.f32 %v2072_v27, %v2080_v34 }
 0xb1b   : > { %v2086_v36 = vmul.f32 1.442695, %v2084_v35 }
 0xb1c   : > { %v2083_v37 = vpop.xlane.xlu1 %2082 }
 0xb1d   : > { %3560 = vpow2.f32 %v2086_v36  ;;  %v2085_v39 = vsub.f32 %v2075_v31, %v2083_v37 }
 0xb1f   : > { %v2088_v41 = vmul.f32 1.442695, %v2085_v39 }
 0xb21   : > { %3562 = vpow2.f32 %v2088_v41 }
 0xb2a   : > { %v3561_v42 = vpop.eup %3560 }
 0xb2b   : > { %v2090_v46 = vsel %vm712_vm2, %v3561_v42, 0.0 }
 0xb2c   : > { %2091 = vadd.xlane.f32.xlu0 %v2090_v46 }
 0xb2e   : > { %v3563_v49 = vpop.eup %3562 }
 0xb2f   : > { %v2093_v52 = vsel %vm712_vm2, %v3563_v49, 0.0  ;;  %v2096_v55 = vpack.c.bf16 %v3563_v49, %v3561_v42 }
 0xb30   : > { %2094 = vadd.xlane.f32.xlu1 %v2093_v52 }
 0xb31   : > { %3367 = vmatmul.mubr.msk.bf16.vlgmr.msra.gmra.mxu1 %vm712_vm2, %v2096_v55 }
 0xb32   : > { %3377 = vmatpush3.bf16.msra.mxu1 %v3498_v51  ;;  %3384 = vmatprep.mubr.msk.bf16.mxu1 %vm3603_vm1, %v3602_v7 }
 0xb33   : > { %3378 = vmatprep.subr.bf16.mxu1 %v3602_v7 }
 0xb36   : > { %3379 = vmatpush3.bf16.msra.mxu1 %v3499_v57 }
 0xb37   : > { %3380 = vmatprep.subr.bf16.mxu1 %v3602_v7 }
 0xb3a   : > { %3381 = vmatpush3.bf16.msra.mxu1 %v3500_v58 }
 0xb3b   : > { %3382 = vmatprep.subr.bf16.mxu1 %v3602_v7 }
 0xb3e   : > { %3383 = vmatpush3.bf16.msra.mxu1 %v3501_v62 }
 0xb3f   : > { %3401 = vmatprep.subr.bf16.mxu1 %v3602_v7 }
 0xb41   : > { %3385 = vmatmul.mubr.msk.bf16.vlgmr.msra.gmra.mxu1 %vm582_vm0, %v3738_v25 }
 0xb42   : > { %3402 = vmatpush3.bf16.msra.mxu1 %v3936_v13  ;;  %3403 = vmatprep.mubr.msk.bf16.mxu1 %vm3603_vm1, %v3602_v7 }
 0xb43   : > { %3413 = vmatprep.subr.bf16.mxu1 %v3602_v7 }
 0xbb5   : > { %v2092_v60 = vpop.xlane.xlu0 %2091 }
 0xbb6   : > { %3564 = vrcp.f32 %v2092_v60 }
 0xbb9   : > { %v2095_v61 = vpop.xlane.xlu1 %2094 }
 0xbba   : > { %3566 = vrcp.f32 %v2095_v61 }
 0xbc3   : > { %v3565_v0 = vpop.eup %3564 }
 0xbc7   : > { %v3567_v13 = vpop.eup %3566 }
 0xbf1   : > { %v2134_v63 = vpop.f32.mrf.mxu1 }
 0xbf2   : > { %v2143_v2 = vmul.f32 %v3565_v0, %v2134_v63  ;;  %v3503_v63 = vld [vmem:[%s4263_s11 + $0x18] sm:$0xff]  }
 0xbf3   : > { %v3368_v25 = vpop.f32.mrf.mxu1 }
 0xbf5   : > { %v2137_v1 = vpop.f32.mrf.mxu1 }
 0xbf6   : > { %v2144_v3 = vmul.f32 %v3567_v13, %v2137_v1 }
 0xbf7   : > { %v3369_v5 = vpop.f32.mrf.mxu1 }
 0xbf8   : > { %v2145_v6 = vpack.c.bf16 %v2144_v3, %v2143_v2 }
 0xbfa   : > { %3373 = vmatmul.mubr.msk.bf16.vlgmr.msra.gmra.mxu0 %vm712_vm2, %v2145_v6 }
 0xbfb   : > { %3389 = vmatpush3.msra.mxu0 %v3801_v53 }
 0xbfc   : > { %3390 = vmatprep.subr.mxu0 %v3812_v56 }
 0xbfd   : > { %3391 = vmatpush3.msra.mxu0 %v3812_v56 }
 0xbfe   : > { %3395 = vmatprep.subr.bf16.mxu0 %v3602_v7 }
 0xc01   : > { %v2268_v10 = vpop.f32.mrf.mxu1 }
 0xc02   : > { %v2275_v11 = vmul.f32 %v2268_v10, %v2268_v10 }
 0xc03   : > { %v3386_v12 = vpop.f32.mrf.mxu1 }
 0xc04   : > { %v2277_v14 = vsel %vm712_vm2, %v2275_v11, 0.0 }
 0xc05   : > { %2278 = vadd.xlane.f32.xlu0 %v2277_v14  ;;  %v2271_v15 = vpop.f32.mrf.mxu1 }
 0xc06   : > { %v2276_v16 = vmul.f32 %v2271_v15, %v2271_v15 }
 0xc07   : > { %v3387_v17 = vpop.f32.mrf.mxu1 }
 0xc08   : > { %v2280_v19 = vsel %vm712_vm2, %v2276_v16, 0.0  ;;  %v3592_v17 = vld [vmem:[%s3707_s27] sm:$0xff] }
 0xc09   : > { %2281 = vadd.xlane.f32.xlu1 %v2280_v19 }
 0xc8e   : > { %v2279_v20 = vpop.xlane.xlu0 %2278 }
 0xc8f   : > { %v2283_v53 = vmul.f32 0.0625, %v2279_v20 }
 0xc91   : > { %v2285_v21 = vadd.f32 1e-05, %v2283_v53 }
 0xc92   : > { %v2282_v22 = vpop.xlane.xlu1 %2281 }
 0xc93   : > { %3568 = vrsqrt.f32 %v2285_v21  ;;  %v2284_v56 = vmul.f32 0.0625, %v2282_v22 }
 0xc95   : > { %v2286_v23 = vadd.f32 1e-05, %v2284_v56  ;;  %v3593_v56 = vld [vmem:[%s3707_s27 + $0x8] sm:$0xff] }
 0xc97   : > { %3570 = vrsqrt.f32 %v2286_v23 }
 0xca0   : > { %v3569_v4 = vpop.eup %3568 }
 0xca1   : > { %v2289_v8 = vmul.f32 %v3569_v4, %v2268_v10 }
 0xca3   : > { %v2291_v9 = vmul.f32 %v3881_v38, %v2289_v8 }
 0xca4   : > { %v3571_v24 = vpop.eup %3570 }
 0xca5   : > { %3392 = vmatprep.mubr.msk.f32.mxu0 %vm712_vm2, %v2291_v9  ;;  %v2290_v26 = vmul.f32 %v3571_v24, %v2271_v15  ;;  %v2293_v36 = vmul.f32 %v2291_v9, %v3907_v44  ;;  %v3504_v24 = vld [vmem:[%s4265_s13 + $0x18] sm:$0xff]  }
 0xca7   : > { %v2292_v27 = vmul.f32 %v3881_v38, %v2290_v26  ;;  %v3505_v26 = vld [vmem:[%s4266_s14 + $0x18] sm:$0xff]  }
 0xca9   : > { %3393 = vmatmul.mubr.msk.f32.vlgmr.msra.gmra.mxu0 %vm712_vm2, %v2292_v27 }
 0xcaa   : > { %3396 = vmatpush3.bf16.xpose.msra.mxu0 %v4067_v18  ;;  %3397 = vmatprep.mubr.msk.bf16.mxu0 %vm3603_vm1, %v3602_v7  ;;  %v2294_v18 = vmul.f32 %v2292_v27, %v3909_v45  ;;  %v3506_v27 = vld [vmem:[%s4265_s13 + $0x10] sm:$0xff]  }
 0xcab   : > { %3407 = vmatprep.subr.bf16.mxu0 %v3602_v7 }
 0xcba   : > { %v2192_v28 = vpop.f32.mrf.mxu0 }
 0xcbb   : > { %v2199_v30 = vadd.f32 %v2192_v28, %v4053_v50  ;;  %v3507_v28 = vld [vmem:[%s4266_s14 + $0x10] sm:$0xff]  }
 0xcbc   : > { %v3374_v29 = vpop.f32.mrf.mxu0 }
 0xcbd   : > { %v3509_v29 = vld [vmem:[%s4266_s14 + $0x8] sm:$0xff]  }
 0xcbe   : > { %v2195_v31 = vpop.f32.mrf.mxu0 }
 0xcbf   : > { %v4132_v32 = vadd.f32 %v2195_v31, %v4055_v54  ;;  %v3510_v31 = vld [vmem:[%s4265_s13] sm:$0xff]  }
 0xcc0   : > { %v3375_v33 = vpop.f32.mrf.mxu0 }
 0xd69   : > { %v3394_v34 = vpop.f32.mrf.mxu0 }
 0xd6a   : > { %v2377_v38 = vmul.f32 %v3394_v34, %v3905_v43 }
 0xd6b   : > { %v2367_v35 = vpop.f32.mrf.mxu0 }
 0xd6c   : > { %v2376_v37 = vmul.f32 %v2367_v35, %v3911_v47  ;;  %v2379_v39 = vadd.f32 %v2377_v38, %v2294_v18 }
 0xd6e   : > { %v2378_v41 = vadd.f32 %v2376_v37, %v2293_v36 }
 0xd70   : > { %v2380_v42 = vpack.c.bf16 %v2379_v39, %v2378_v41 }
 0xd72   : > { %3398 = vmatmul.mubr.msk.bf16.vlgmr.msra.gmra.mxu0 %vm712_vm2, %v2380_v42  ;;  %v3069_v42 = vld [vmem:[%s4264_s12] ss:$0 sm:$0xff] }
 0xd73   : > { %3409 = vmatprep.mubr.msk.bf16.mxu0 %vm3603_vm1, %v3602_v7  ;;  %3408 = vmatpush3.bf16.msra.mxu0 %v3503_v63 }
 0xd74   : > { %3425 = vmatprep.subr.bf16.mxu0 %v3602_v7 }
 0xe32   : > { %v2418_v50 = vpop.f32.mrf.mxu0 }
 0xe33   : > { %v2419_v54 = vadd.f32 %v2418_v50, %v3970_v40 }
 0xe34   : > { %v3399_v46 = vpop.f32.mrf.mxu0 }
 0xe35   : > { %v2425_v43 = vsel %vm712_vm2, %v2419_v54, -inf }
 0xe36   : > { %2426 = vmax.xlane.f32.xlu0 %v2425_v43  ;;  %v2421_v45 = vpop.f32.mrf.mxu0 }
 0xe37   : > { %v2422_v44 = vadd.f32 %v2421_v45, %v3973_v48  ;;  %v3512_v45 = vld [vmem:[%s4267_s15 + $0x38] sm:$0xff]  }
 0xe38   : > { %v3400_v49 = vpop.f32.mrf.mxu0 }
 0xe39   : > { %v2428_v47 = vsel %vm712_vm2, %v2422_v44, -inf  ;;  %v3514_v49 = vld [vmem:[%s4267_s15 + $0x28] sm:$0xff]  }
 0xe3a   : > { %2429 = vmax.xlane.f32.xlu1 %v2428_v47  ;;  %v3515_v47 = vld [vmem:[%s4267_s15 + $0x20] sm:$0xff]  }
 0xebf   : > { %v2427_v51 = vpop.xlane.xlu0 %2426 }
 0xec0   : > { %v2431_v52 = vsub.f32 %v2419_v54, %v2427_v51  ;;  %v3516_v51 = vld [vmem:[%s4267_s15 + $0x18] sm:$0xff]  }
 0xec2   : > { %v2433_v55 = vmul.f32 1.442695, %v2431_v52  ;;  %v3517_v52 = vld [vmem:[%s4267_s15 + $0x10] sm:$0xff]  }
 0xec3   : > { %v2430_v57 = vpop.xlane.xlu1 %2429 }
 0xec4   : > { %3572 = vpow2.f32 %v2433_v55  ;;  %v2432_v58 = vsub.f32 %v2422_v44, %v2430_v57  ;;  %v3513_v44 = vld [vmem:[%s4267_s15 + $0x30] sm:$0xff]   ;;  %v3518_v55 = vld [vmem:[%s4267_s15 + $0x8] sm:$0xff]   ;;  %v3519_v57 = vld [vmem:[%s4267_s15] sm:$0xff]  }
 0xec6   : > { %v2435_v62 = vmul.f32 1.442695, %v2432_v58 }
 0xec8   : > { %3574 = vpow2.f32 %v2435_v62 }
 0xed1   : > { %v3573_v40 = vpop.eup %3572 }
 0xed2   : > { %v2437_v59 = vsel %vm712_vm2, %v3573_v40, 0.0 }
 0xed3   : > { %2438 = vadd.xlane.f32.xlu0 %v2437_v59 }
 0xed5   : > { %v3575_v60 = vpop.eup %3574 }
 0xed6   : > { %v2440_v61 = vsel %vm712_vm2, %v3575_v60, 0.0  ;;  %v2443_v48 = vpack.c.bf16 %v3575_v60, %v3573_v40 }
 0xed7   : > { %2441 = vadd.xlane.f32.xlu1 %v2440_v61 }
 0xed8   : > { %3404 = vmatmul.mubr.msk.bf16.vlgmr.msra.gmra.mxu1 %vm712_vm2, %v2443_v48 }
 0xed9   : > { %3421 = vmatprep.mubr.msk.bf16.mxu1 %vm3603_vm1, %v3602_v7  ;;  %3414 = vmatpush3.bf16.msra.mxu1 %v3504_v24 }
 0xeda   : > { %3415 = vmatprep.subr.bf16.mxu1 %v3602_v7 }
 0xedd   : > { %3416 = vmatpush3.bf16.msra.mxu1 %v3506_v27 }
 0xede   : > { %3417 = vmatprep.subr.bf16.mxu1 %v3602_v7 }
 0xf5c   : > { %v2439_v25 = vpop.xlane.xlu0 %2438 }
 0xf5d   : > { %3576 = vrcp.f32 %v2439_v25 }
 0xf60   : > { %v2442_v0 = vpop.xlane.xlu1 %2441 }
 0xf61   : > { %3578 = vrcp.f32 %v2442_v0 }
 0xf6a   : > { %v3577_v2 = vpop.eup %3576 }
 0xf6e   : > { %v3579_v3 = vpop.eup %3578 }
 0xf98   : > { %v2481_v13 = vpop.f32.mrf.mxu1 }
 0xf99   : > { %v2490_v6 = vmul.f32 %v3577_v2, %v2481_v13 }
 0xf9a   : > { %v3405_v1 = vpop.f32.mrf.mxu1 }
 0xf9c   : > { %v2484_v5 = vpop.f32.mrf.mxu1 }
 0xf9d   : > { %v2491_v10 = vmul.f32 %v3579_v3, %v2484_v5 }
 0xf9e   : > { %v3406_v11 = vpop.f32.mrf.mxu1 }
 0xf9f   : > { %v2492_v12 = vpack.c.bf16 %v2491_v10, %v2490_v6 }
 0xfa1   : > { %3410 = vmatmul.mubr.msk.bf16.vlgmr.msra.gmra.mxu0 %vm712_vm2, %v2492_v12 }
 0xfa2   : > { %3433 = vmatprep.mubr.msk.bf16.mxu0 %vm3603_vm1, %v3602_v7  ;;  %3426 = vmatpush3.bf16.msra.mxu0 %v3505_v26 }
 0xfa3   : > { %3427 = vmatprep.subr.bf16.mxu0 %v3602_v7 }
 0xfa6   : > { %3428 = vmatpush3.bf16.msra.mxu0 %v3507_v28 }
 0xfa7   : > { %3429 = vmatprep.subr.bf16.mxu0 %v3602_v7 }
 0xfaa   : > { %3430 = vmatpush3.bf16.msra.mxu0 %v3509_v29 }
 0xfab   : > { %3431 = vmatprep.subr.bf16.mxu0 %v3602_v7 }
0x1061   : > { %v2539_v14 = vpop.f32.mrf.mxu0 }
0x1062   : > { %v2546_v15 = vadd.f32 %v2539_v14, %v2199_v30  ;;  %v3508_v30 = vld [vmem:[%s4265_s13 + $0x8] sm:$0xff]  }
0x1063   : > { %v3411_v16 = vpop.f32.mrf.mxu0  ;;  %3418 = vmatpush3.bf16.msra.mxu1 %v3508_v30 }
0x1064   : > { %v4158_v19 = vadd.f32 %v3592_v17, %v2546_v15  ;;  %3419 = vmatprep.subr.bf16.mxu1 %v3602_v7 }
0x1065   : > { %v2542_v20 = vpop.f32.mrf.mxu0 }
0x1066   : > { %v2547_v53 = vadd.f32 %v2542_v20, %v4132_v32  ;;  %v2551_v21 = vmul.f32 %v4158_v19, %v4158_v19  ;;  %v3511_v32 = vld [vmem:[%s4266_s14] sm:$0xff]  }
0x1067   : > { %v3412_v22 = vpop.f32.mrf.mxu0  ;;  %3420 = vmatpush3.bf16.msra.mxu1 %v3510_v31  ;;  %3432 = vmatpush3.bf16.msra.mxu0 %v3511_v32 }
0x1068   : > { %v4164_v23 = vadd.f32 %v3593_v56, %v2547_v53  ;;  %v2553_v4 = vsel %vm582_vm0, %v2551_v21, 0.0  ;;  %3437 = vmatprep.subr.bf16.mxu1 %v3602_v7 }
0x1069   : > { %2554 = vadd.xlane.f32.xlu0 %v2553_v4 }
0x106a   : > { %v2552_v8 = vmul.f32 %v4164_v23, %v4164_v23 }
0x106c   : > { %v2556_v9 = vsel %vm582_vm0, %v2552_v8, 0.0 }
0x106d   : > { %2557 = vadd.xlane.f32.xlu1 %v2556_v9 }
0x10f2   : > { %v2555_v33 = vpop.xlane.xlu0 %2554 }
0x10f3   : > { %v2559_v34 = vmul.f32 0.015625, %v2555_v33 }
0x10f5   : > { %v2561_v38 = vadd.f32 1e-05, %v2559_v34 }
0x10f6   : > { %v2558_v35 = vpop.xlane.xlu1 %2557 }
0x10f7   : > { %3580 = vrsqrt.f32 %v2561_v38  ;;  %v2560_v18 = vmul.f32 0.015625, %v2558_v35 }
0x10f9   : > { %v2562_v36 = vadd.f32 1e-05, %v2560_v18 }
0x10fb   : > { %3582 = vrsqrt.f32 %v2562_v36 }
0x1104   : > { %v3581_v37 = vpop.eup %3580 }
0x1105   : > { %v2565_v39 = vmul.f32 %v3581_v37, %v4158_v19 }
0x1107   : > { %v2573_v54 = vmul.f32 %v3069_v42, %v2565_v39 }
0x1108   : > { %v3583_v41 = vpop.eup %3582 }
0x1109   : > { %v2566_v50 = vmul.f32 %v3583_v41, %v4164_v23 }
0x110b   : > { %v2574_v46 = vmul.f32 %v3069_v42, %v2566_v50 }
0x110d   : > { %v2607_v43 = vpack.c.bf16 %v2574_v46, %v2573_v54 }
0x110f   : > { %3422 = vmatmul.mubr.msk.bf16.vlgmr.msra.gmra.mxu1 %vm582_vm0, %v2607_v43  ;;  %3434 = vmatmul.mubr.msk.bf16.vlgmr.msra.gmra.mxu0 %vm582_vm0, %v2607_v43 }
0x1110   : > { %3453 = vmatprep.mubr.msk.bf16.mxu1 %vm3603_vm1, %v3602_v7  ;;  %3438 = vmatpush3.bf16.msra.mxu1 %v3512_v45 }
0x1111   : > { %3439 = vmatprep.subr.bf16.mxu1 %v3602_v7 }
0x1114   : > { %3440 = vmatpush3.bf16.msra.mxu1 %v3513_v44 }
0x1115   : > { %3441 = vmatprep.subr.bf16.mxu1 %v3602_v7 }
0x1118   : > { %3442 = vmatpush3.bf16.msra.mxu1 %v3514_v49 }
0x1119   : > { %3443 = vmatprep.subr.bf16.mxu1 %v3602_v7 }
0x111c   : > { %3444 = vmatpush3.bf16.msra.mxu1 %v3515_v47 }
0x111d   : > { %3445 = vmatprep.subr.bf16.mxu1 %v3602_v7 }
0x1120   : > { %3446 = vmatpush3.bf16.msra.mxu1 %v3516_v51 }
0x1121   : > { %3447 = vmatprep.subr.bf16.mxu1 %v3602_v7 }
0x1124   : > { %3448 = vmatpush3.bf16.msra.mxu1 %v3517_v52 }
0x1125   : > { %3449 = vmatprep.subr.bf16.mxu1 %v3602_v7 }
0x1128   : > { %3450 = vmatpush3.bf16.msra.mxu1 %v3518_v55 }
0x1129   : > { %3451 = vmatprep.subr.bf16.mxu1 %v3602_v7 }
0x112c   : > { %3452 = vmatpush3.bf16.msra.mxu1 %v3519_v57 }
0x11cf   : > { %v2669_v58 = vpop.f32.mrf.mxu1  ;;  %v2734_v62 = vpop.f32.mrf.mxu0 }
0x11d0   : > { %v3080_v40 = vmul.f32 -1.442695, %v2669_v58 }
0x11d1   : > { %v3423_v59 = vpop.f32.mrf.mxu1  ;;  %v3435_v60 = vpop.f32.mrf.mxu0 }
0x11d2   : > { %3584 = vpow2.f32 %v3080_v40 }
0x11d3   : > { %v2672_v61 = vpop.f32.mrf.mxu1  ;;  %v2737_v48 = vpop.f32.mrf.mxu0 }
0x11d4   : > { %v3081_v63 = vmul.f32 -1.442695, %v2672_v61 }
0x11d5   : > { %v3424_v25 = vpop.f32.mrf.mxu1  ;;  %v3436_v0 = vpop.f32.mrf.mxu0 }
0x11d6   : > { %3586 = vpow2.f32 %v3081_v63 }
0x11df   : > { %v3585_v13 = vpop.eup %3584 }
0x11e0   : > { %v2747_v7 = vadd.f32 1.0, %v3585_v13 }
0x11e2   : > { %3588 = vrcp.f32 %v2747_v7 }
0x11e3   : > { %v3587_v1 = vpop.eup %3586 }
0x11e4   : > { %v2748_v2 = vadd.f32 1.0, %v3587_v1 }
0x11e6   : > { %3590 = vrcp.f32 %v2748_v2 }
0x11ef   : > { %v3589_v3 = vpop.eup %3588 }
0x11f0   : > { %v2753_v5 = vmul.f32 %v3589_v3, %v2669_v58 }
0x11f2   : > { %v2755_v11 = vmul.f32 %v2753_v5, %v2734_v62 }
0x11f3   : > { %v3591_v6 = vpop.eup %3590 }
0x11f4   : > { %v2754_v10 = vmul.f32 %v3591_v6, %v2672_v61 }
0x11f6   : > { %v2756_v12 = vmul.f32 %v2754_v10, %v2737_v48 }
0x11f8   : > { %v2757_v14 = vpack.c.bf16 %v2756_v12, %v2755_v11 }
0x11fa   : > { %3454 = vmatmul.mubr.bf16.vlgmr.msra.gmra.mxu1 %v2757_v14 }
0x12ba   : > { %v2840_v15 = vpop.f32.mrf.mxu1 }
0x12bb   : > { %v2847_v16 = vadd.f32 %v2840_v15, %v4158_v19 }
0x12bc   : > { %v3455_v17 = vpop.f32.mrf.mxu1 }
0x12bd   : > { %2849 = vst.msk [vmem:[%s575_s25] sm:$0xff] %vm582_vm0, %v2847_v16 }
0x12be   : > { %v2843_v20 = vpop.f32.mrf.mxu1 }
0x12bf   : > { %v2848_v53 = vadd.f32 %v2843_v20, %v4164_v23 }
0x12c0   : > { %v3456_v21 = vpop.f32.mrf.mxu1 }
0x12c1   : > { %2850 = vst.msk [vmem:[%s575_s25 + $0x8] sm:$0xff] %vm582_vm0, %v2848_v53 }
0x12c2 PF: > { %s26_s21 = sadd.s32 1, %s3600_s21  }
0x12c3   : > { %p23_p4 = scmp.ge.s32.totalorder %s26_s21, 4  }
0x12c5   :  { %25 = sbr.rel (!%p23_p4) target bundleno = 2 (0x2), region = 131 }

</bundles_post_ra>
